<compile_context>
chip_gen: v5e
topology: v5e:2x2
jax: 0.10.0
libtpu: 0.0.40
codegen_flags: <defaults>
</compile_context>

<pallas_src>
import functools

import numpy as np
import jax
import jax.numpy as jnp
from jax.experimental import pallas as pl
from jax.experimental.pallas import tpu as pltpu


def _round_up(v, m):
    return (v + m - 1) // m * m


_VMEM_LIMIT = 48 * 1024 * 1024  # explicit scoped-VMEM cap, headroom under v7x 64 MiB


# ---------------------------------------------------------------------------
# Kernel 1: fused MinMaxNorm (forward) + Linear.
#   rows-by-channels layout, batch folded into rows, weights in bf16,
#   f32 accumulation.  scale/shift scalars arrive via SMEM.
# ---------------------------------------------------------------------------
def _norm_linear_kernel(scal_ref, x_ref, w_ref, b_ref, o_ref):
    scale = scal_ref[0]
    shift = scal_ref[1]
    xn = x_ref[...] * scale + shift                       # MinMaxNorm (forward)
    y = jnp.dot(xn.astype(jnp.bfloat16), w_ref[...],
                preferred_element_type=jnp.float32) + b_ref[...]
    o_ref[...] = y.astype(o_ref.dtype)


def _norm_linear(x_rows, w_bf16, b_row, scal, block):
    total, K = x_rows.shape
    Nout = w_bf16.shape[1]
    # Grow the row tile while it still divides the row count (MXU occupancy).
    tile = block
    while tile * 2 <= 512 and total % (tile * 2) == 0:
        tile *= 2
    grid = (total // tile,)
    return pl.pallas_call(
        _norm_linear_kernel,
        out_shape=jax.ShapeDtypeStruct((total, Nout), jnp.bfloat16),
        grid=grid,
        in_specs=[
            pl.BlockSpec(memory_space=pltpu.MemorySpace.SMEM),     # scale/shift
            pl.BlockSpec((tile, K), lambda i: (i, 0)),
            pl.BlockSpec((K, Nout), lambda i: (0, 0)),
            pl.BlockSpec((1, Nout), lambda i: (0, 0)),
        ],
        out_specs=pl.BlockSpec((tile, Nout), lambda i: (i, 0)),
        compiler_params=pltpu.CompilerParams(
            dimension_semantics=("parallel",),
            vmem_limit_bytes=_VMEM_LIMIT),
    )(scal, x_rows, w_bf16, b_row)


# ---------------------------------------------------------------------------
# Kernel 2: KV-tiled flash attention core + reverse MinMaxNorm + proj +
#           tau-scaled residual (fused epilogue at the last KV tile).
#   grid = (B, q_tiles, kv_tiles); m/l/acc live in VMEM scratch.
# ---------------------------------------------------------------------------
def _flash_attn_kernel(scal_ref, q_ref, kv_ref, xres_ref, wp_ref, bp_ref,
                       o_ref, m_sc, l_sc, acc_sc, *, sy, block_kv):
    ki = pl.program_id(2)
    Cp = acc_sc.shape[1]

    @pl.when(ki == 0)
    def _():
        m_sc[...] = jnp.full(m_sc.shape, -jnp.inf, m_sc.dtype)
        l_sc[...] = jnp.zeros_like(l_sc)
        acc_sc[...] = jnp.zeros_like(acc_sc)

    q = q_ref[0]                     # (block_q, Cp) bf16, 1/C scale pre-folded
    kv = kv_ref[0]                   # (block_kv, 2*Cp) bf16
    k = kv[:, :Cp]
    v = kv[:, Cp:]

    # scores = q @ k^T   (scale already folded into q); f32 accumulation
    s = jax.lax.dot_general(q, k, (((1,), (1,)), ((), ())),
                            preferred_element_type=jnp.float32)
    if sy % block_kv != 0:           # static: mask zero-padded KV rows
        col = ki * block_kv + jax.lax.broadcasted_iota(jnp.int32, s.shape, 1)
        s = jnp.where(col < sy, s, -1e30)

    # online softmax update (all f32)
    m_prev = m_sc[...]
    m_new = jnp.maximum(m_prev, jnp.max(s, axis=-1, keepdims=True))
    alpha = jnp.exp(m_prev - m_new)
    p = jnp.exp(s - m_new)
    l_sc[...] = alpha * l_sc[...] + jnp.sum(p, axis=-1, keepdims=True)
    acc_sc[...] = alpha * acc_sc[...] + jnp.dot(
        p.astype(jnp.bfloat16), v, preferred_element_type=jnp.float32)
    m_sc[...] = m_new

    @pl.when(ki == pl.num_programs(2) - 1)
    def _():
        x_min = scal_ref[0]
        x_max = scal_ref[1]
        tau = scal_ref[2]
        out = acc_sc[...] * pl.reciprocal(l_sc[...], approx=True)
        out = (out + 1.0) * (x_max - x_min) * 0.5 + x_min   # reverse MinMaxNorm
        proj = jnp.dot(out.astype(jnp.bfloat16), wp_ref[...],
                       preferred_element_type=jnp.float32) + bp_ref[...]
        o_ref[0] = tau * proj + xres_ref[0]


# ---------------------------------------------------------------------------
# SelfAttention.forward
# ---------------------------------------------------------------------------
@functools.partial(jax.jit, static_argnames=("block_q", "block_kv"))
def self_attention_forward(y_adapt, x, params, block_q=None, block_kv=None):
    """y_adapt: (B, C, M, N) NCHW ; x: (B, C, H, W) NCHW -> (B, C, H, W)."""
    B, C, H, W = x.shape
    _, Cy, M, N = y_adapt.shape
    assert Cy == C
    Sx = H * W
    Sy = M * N
    f32 = jnp.float32
    Cp = _round_up(C, 128)           # lane-dense channel dim

    # Tile sizes (bf16 sublane packing -> multiples of 16).
    if block_q is None:
        block_q = min(256, _round_up(Sx, 16))
    else:
        block_q = _round_up(block_q, 16)
    if block_kv is None:
        block_kv = min(512, _round_up(Sy, 16))
    else:
        block_kv = _round_up(block_kv, 16)
    Sx_p = _round_up(Sx, block_q)
    Sy_p = _round_up(Sy, block_kv)

    # Global MinMaxNorm statistics (whole-tensor scalar reductions; JAX glue).
    # NOTE: like the reference, no epsilon — constant input => div-by-zero.
    x_min = jnp.min(x).astype(f32)
    x_max = jnp.max(x).astype(f32)
    y_min = jnp.min(y_adapt).astype(f32)
    y_max = jnp.max(y_adapt).astype(f32)
    x_scale = 2.0 / (x_max - x_min)
    x_shift = -x_min * x_scale - 1.0
    y_scale = 2.0 / (y_max - y_min)
    y_shift = -y_min * y_scale - 1.0

    # NCHW -> (B, S_padded, C_padded), zero-padded (padding is annihilated by
    # the zero-padded weight rows / masked KV columns / final slice).
    def to_rows(t, S, S_pad):
        t = t.reshape(B, C, S).transpose(0, 2, 1).astype(f32)
        return jnp.pad(t, ((0, 0), (0, S_pad - S), (0, Cp - C)))

    x_flat = to_rows(x, Sx, Sx_p)            # (B, Sx_p, Cp) f32
    y_flat = to_rows(y_adapt, Sy, Sy_p)      # (B, Sy_p, Cp) f32

    # torch nn.Linear weights are (out, in); kernels use (in, out). Pad to Cp.
    def pad_w(w_oi):
        w = w_oi.T.astype(f32)
        return jnp.pad(w, ((0, Cp - w.shape[0]), (0, Cp - w.shape[1])))

    def pad_b(b):
        return jnp.pad(b.astype(f32), (0, Cp - b.shape[0]))

    inv_c = 1.0 / float(C)                   # fold the 1/C attention scale into q
    wq = (pad_w(params['q_w']) * inv_c).astype(jnp.bfloat16)
    bq = (pad_b(params['q_b']) * inv_c)[None, :]
    wk = pad_w(params['kv_w'][:C, :])        # kv.view(B,-1,2,C): first C -> k
    wv = pad_w(params['kv_w'][C:, :])        # second C -> v
    wkv = jnp.concatenate([wk, wv], axis=1).astype(jnp.bfloat16)   # (Cp, 2Cp)
    bkv = jnp.concatenate([pad_b(params['kv_b'][:C]),
                           pad_b(params['kv_b'][C:])])[None, :]
    wp = pad_w(params['proj_w']).astype(jnp.bfloat16)
    bp = pad_b(params['proj_b'])[None, :]

    # ---- projections: batch folded into rows, one bf16 matmul each ----
    q = _norm_linear(x_flat.reshape(B * Sx_p, Cp), wq, bq,
                     jnp.stack([x_scale, x_shift]), block_q)
    kv = _norm_linear(y_flat.reshape(B * Sy_p, Cp), wkv, bkv,
                      jnp.stack([y_scale, y_shift]), block_kv)
    q = q.reshape(B, Sx_p, Cp)               # bf16
    kv = kv.reshape(B, Sy_p, 2 * Cp)         # bf16 (k | v)

    # ---- flash attention + reverse MinMaxNorm + proj + tau residual ----
    tau = params['tau'].reshape(()).astype(f32)
    scal = jnp.stack([x_min, x_max, tau])
    n_q = Sx_p // block_q
    n_kv = Sy_p // block_kv

    out_flat = pl.pallas_call(
        functools.partial(_flash_attn_kernel, sy=Sy, block_kv=block_kv),
        out_shape=jax.ShapeDtypeStruct((B, Sx_p, Cp), f32),
        grid=(B, n_q, n_kv),
        in_specs=[
            pl.BlockSpec(memory_space=pltpu.MemorySpace.SMEM),            # scalars
            pl.BlockSpec((1, block_q, Cp), lambda b, qi, ki: (b, qi, 0)),   # q
            pl.BlockSpec((1, block_kv, 2 * Cp), lambda b, qi, ki: (b, ki, 0)),  # kv
            pl.BlockSpec((1, block_q, Cp), lambda b, qi, ki: (b, qi, 0)),   # x (residual)
            pl.BlockSpec((Cp, Cp), lambda b, qi, ki: (0, 0)),               # wp
            pl.BlockSpec((1, Cp), lambda b, qi, ki: (0, 0)),                # bp
        ],
        out_specs=pl.BlockSpec((1, block_q, Cp), lambda b, qi, ki: (b, qi, 0)),
        scratch_shapes=[
            pltpu.VMEM((block_q, 1), f32),    # running max
            pltpu.VMEM((block_q, 1), f32),    # running sum
            pltpu.VMEM((block_q, Cp), f32),   # output accumulator
        ],
        compiler_params=pltpu.CompilerParams(
            dimension_semantics=("parallel", "parallel", "arbitrary"),
            vmem_limit_bytes=_VMEM_LIMIT),
    )(scal, q, kv, x_flat, wp, bp)

    # back to NCHW, dropping the row/channel padding
    return out_flat[:, :Sx, :C].transpose(0, 2, 1).reshape(B, C, H, W)


# ---------------------------------------------------------------------------
# Pure-JAX reference (mirrors the PyTorch module, f32 end-to-end)
# ---------------------------------------------------------------------------
def ref_self_attention(y_adapt, x, params):
    B, C, H, W = x.shape
    xf = x.reshape(B, C, H * W).transpose(0, 2, 1)
    yf = y_adapt.reshape(B, C, -1).transpose(0, 2, 1)
    xmin, xmax = xf.min(), xf.max()
    ymin, ymax = yf.min(), yf.max()
    xn = 2 * (xf - xmin) / (xmax - xmin) - 1
    yn = 2 * (yf - ymin) / (ymax - ymin) - 1
    q = xn @ params['q_w'].T + params['q_b']
    kv = (yn @ params['kv_w'].T + params['kv_b']).reshape(B, -1, 2, C)
    k, v = kv[:, :, 0, :], kv[:, :, 1, :]
    attn = jax.nn.softmax(q @ k.transpose(0, 2, 1) / C, axis=-1)
    out = attn @ v
    out = (out + 1) * (xmax - xmin) / 2 + xmin
    out = out @ params['proj_w'].T + params['proj_b']
    return params['tau'].reshape(()) * out.transpose(0, 2, 1).reshape(B, C, H, W) + x


# ---------------------------------------------------------------------------
if __name__ == "__main__":
    key = jax.random.PRNGKey(0)
    ks = jax.random.split(key, 8)

    B, C, H, W = 2, 16, 8, 8      # x: (B, C, H, W);  Sx = 64
    M, N = 6, 6                   # y_adapt: (B, C, M, N);  Sy = 36 (exercises masking)

    x = jax.random.normal(ks[0], (B, C, H, W), jnp.float32)
    y_adapt = jax.random.normal(ks[1], (B, C, M, N), jnp.float32)

    params = dict(
        q_w=0.1 * jax.random.normal(ks[2], (C, C), jnp.float32),
        q_b=0.05 * jax.random.normal(ks[3], (C,), jnp.float32),
        kv_w=0.1 * jax.random.normal(ks[4], (2 * C, C), jnp.float32),
        kv_b=0.05 * jax.random.normal(ks[5], (2 * C,), jnp.float32),
        proj_w=0.1 * jax.random.normal(ks[6], (C, C), jnp.float32),
        proj_b=0.05 * jax.random.normal(ks[7], (C,), jnp.float32),
        tau=jnp.full((1,), 0.5, jnp.float32),  # torch init is 0; nonzero to exercise the path
    )

    ref = np.asarray(ref_self_attention(y_adapt, x, params))

    # (a) small explicit tiles: multiple q tiles, multiple KV tiles + masking
    out_a = jax.block_until_ready(
        self_attention_forward(y_adapt, x, params, block_q=32, block_kv=16))
    np.testing.assert_allclose(np.asarray(out_a), ref, rtol=2e-2, atol=2e-2)

    # (b) auto tile selection (single KV tile, masked tail)
    out_b = jax.block_until_ready(self_attention_forward(y_adapt, x, params))
    np.testing.assert_allclose(np.asarray(out_b), ref, rtol=2e-2, atol=2e-2)

    print("KERNEL_OK")
</pallas_src>

<mosaic_0001>
module attributes {stable_mosaic.version = 11 : i64} {
  func.func @_norm_linear_kernel(%arg0: i32, %arg1: memref<2xf32, #tpu.memory_space<smem>>, %arg2: memref<32x128xf32, #tpu.memory_space<vmem>>, %arg3: memref<128x256xbf16, #tpu.memory_space<vmem>>, %arg4: memref<1x256xf32, #tpu.memory_space<vmem>>, %arg5: memref<32x256xbf16, #tpu.memory_space<vmem>>) attributes {dimension_semantics = [#tpu.dimension_semantics<parallel>], iteration_bounds = array<i64: 3>, scalar_prefetch = 0 : i64, scratch_operands = 0 : i64, tpu.core_type = #tpu.core_type<tc>, window_params = [{transform_indices = @transform_0, window_bounds = array<i64: 2>}, {transform_indices = @transform_1, window_bounds = array<i64: 32, 128>}, {pipeline_mode = #tpu.pipeline_mode<synchronous>, transform_indices = @transform_2, window_bounds = array<i64: 128, 256>}, {pipeline_mode = #tpu.pipeline_mode<synchronous>, transform_indices = @transform_3, window_bounds = array<i64: 1, 256>}, {transform_indices = @transform_4, window_bounds = array<i64: 32, 256>}]} {
    %c0 = arith.constant 0 : index
    %0 = memref.load %arg1[%c0] : memref<2xf32, #tpu.memory_space<smem>>
    %c1 = arith.constant 1 : index
    %1 = memref.load %arg1[%c1] : memref<2xf32, #tpu.memory_space<smem>>
    %c0_0 = arith.constant 0 : index
    %c0_1 = arith.constant 0 : index
    %2 = vector.load %arg2[%c0_0, %c0_1] : memref<32x128xf32, #tpu.memory_space<vmem>>, vector<32x128xf32>
    %3 = vector.broadcast %0 : f32 to vector<32x128xf32>
    %4 = arith.mulf %2, %3 : vector<32x128xf32>
    %5 = vector.broadcast %1 : f32 to vector<32x128xf32>
    %6 = arith.addf %4, %5 : vector<32x128xf32>
    %7 = arith.truncf %6 : vector<32x128xf32> to vector<32x128xbf16>
    %c0_2 = arith.constant 0 : index
    %c0_3 = arith.constant 0 : index
    %8 = vector.load %arg3[%c0_2, %c0_3] : memref<128x256xbf16, #tpu.memory_space<vmem>>, vector<128x256xbf16>
    %cst = arith.constant dense<0.000000e+00> : vector<32x256xf32>
    %9 = tpu.matmul %7, %8, %cst {dimension_numbers = #tpu.dot_dimension_numbers<[1], [0], [0], [1], [0, 0, 1, 1], [], []>} : vector<32x128xbf16>, vector<128x256xbf16>, vector<32x256xf32> -> vector<32x256xf32>
    %c0_4 = arith.constant 0 : index
    %c0_5 = arith.constant 0 : index
    %10 = vector.load %arg4[%c0_4, %c0_5] : memref<1x256xf32, #tpu.memory_space<vmem>>, vector<1x256xf32>
    %11 = vector.broadcast %10 : vector<1x256xf32> to vector<32x256xf32>
    %12 = arith.addf %9, %11 : vector<32x256xf32>
    %13 = arith.truncf %12 : vector<32x256xf32> to vector<32x256xbf16>
    %c0_6 = arith.constant 0 : index
    %c0_7 = arith.constant 0 : index
    %14 = vector.load %arg5[%c0_6, %c0_7] : memref<32x256xbf16, #tpu.memory_space<vmem>>, vector<32x256xbf16>
    tpu.vector_store %arg5[%c0_6, %c0_7], %13 {strides = array<i32>} : memref<32x256xbf16, #tpu.memory_space<vmem>>, vector<32x256xbf16>,
    return
  }
  func.func @transform_0(%arg0: i32) -> i32 {
    %c0_i32 = arith.constant 0 : i32
    %c0_i32_0 = arith.constant 0 : i32
    return %c0_i32 : i32
  }
  func.func @transform_1(%arg0: i32) -> (i32, i32) {
    %c0_i32 = arith.constant 0 : i32
    %c0_i32_0 = arith.constant 0 : i32
    return %arg0, %c0_i32 : i32, i32
  }
  func.func @transform_2(%arg0: i32) -> (i32, i32) {
    %c0_i32 = arith.constant 0 : i32
    %c0_i32_0 = arith.constant 0 : i32
    %c0_i32_1 = arith.constant 0 : i32
    return %c0_i32, %c0_i32_0 : i32, i32
  }
  func.func @transform_3(%arg0: i32) -> (i32, i32) {
    %c0_i32 = arith.constant 0 : i32
    %c0_i32_0 = arith.constant 0 : i32
    %c0_i32_1 = arith.constant 0 : i32
    return %c0_i32, %c0_i32_0 : i32, i32
  }
  func.func @transform_4(%arg0: i32) -> (i32, i32) {
    %c0_i32 = arith.constant 0 : i32
    %c0_i32_0 = arith.constant 0 : i32
    return %arg0, %c0_i32 : i32, i32
  }
}

module attributes {stable_mosaic.version = 11 : i64} {
  func.func @_norm_linear_kernel(%arg0: i32, %arg1: memref<2xf32, #tpu.memory_space<smem>>, %arg2: memref<128x128xf32, #tpu.memory_space<vmem>>, %arg3: memref<128x128xbf16, #tpu.memory_space<vmem>>, %arg4: memref<1x128xf32, #tpu.memory_space<vmem>>, %arg5: memref<128x128xbf16, #tpu.memory_space<vmem>>) attributes {dimension_semantics = [#tpu.dimension_semantics<parallel>], iteration_bounds = array<i64: 1>, scalar_prefetch = 0 : i64, scratch_operands = 0 : i64, tpu.core_type = #tpu.core_type<tc>, window_params = [{transform_indices = @transform_0, window_bounds = array<i64: 2>}, {transform_indices = @transform_1, window_bounds = array<i64: 128, 128>}, {pipeline_mode = #tpu.pipeline_mode<synchronous>, transform_indices = @transform_2, window_bounds = array<i64: 128, 128>}, {pipeline_mode = #tpu.pipeline_mode<synchronous>, transform_indices = @transform_3, window_bounds = array<i64: 1, 128>}, {transform_indices = @transform_4, window_bounds = array<i64: 128, 128>}]} {
    %c0 = arith.constant 0 : index
    %0 = memref.load %arg1[%c0] : memref<2xf32, #tpu.memory_space<smem>>
    %c1 = arith.constant 1 : index
    %1 = memref.load %arg1[%c1] : memref<2xf32, #tpu.memory_space<smem>>
    %c0_0 = arith.constant 0 : index
    %c0_1 = arith.constant 0 : index
    %2 = vector.load %arg2[%c0_0, %c0_1] : memref<128x128xf32, #tpu.memory_space<vmem>>, vector<128x128xf32>
    %3 = vector.broadcast %0 : f32 to vector<128x128xf32>
    %4 = arith.mulf %2, %3 : vector<128x128xf32>
    %5 = vector.broadcast %1 : f32 to vector<128x128xf32>
    %6 = arith.addf %4, %5 : vector<128x128xf32>
    %7 = arith.truncf %6 : vector<128x128xf32> to vector<128x128xbf16>
    %c0_2 = arith.constant 0 : index
    %c0_3 = arith.constant 0 : index
    %8 = vector.load %arg3[%c0_2, %c0_3] : memref<128x128xbf16, #tpu.memory_space<vmem>>, vector<128x128xbf16>
    %cst = arith.constant dense<0.000000e+00> : vector<128x128xf32>
    %9 = tpu.matmul %7, %8, %cst {dimension_numbers = #tpu.dot_dimension_numbers<[1], [0], [0], [1], [0, 0, 1, 1], [], []>} : vector<128x128xbf16>, vector<128x128xbf16>, vector<128x128xf32> -> vector<128x128xf32>
    %c0_4 = arith.constant 0 : index
    %c0_5 = arith.constant 0 : index
    %10 = vector.load %arg4[%c0_4, %c0_5] : memref<1x128xf32, #tpu.memory_space<vmem>>, vector<1x128xf32>
    %11 = vector.broadcast %10 : vector<1x128xf32> to vector<128x128xf32>
    %12 = arith.addf %9, %11 : vector<128x128xf32>
    %13 = arith.truncf %12 : vector<128x128xf32> to vector<128x128xbf16>
    %c0_6 = arith.constant 0 : index
    %c0_7 = arith.constant 0 : index
    %14 = vector.load %arg5[%c0_6, %c0_7] : memref<128x128xbf16, #tpu.memory_space<vmem>>, vector<128x128xbf16>
    tpu.vector_store %arg5[%c0_6, %c0_7], %13 {strides = array<i32>} : memref<128x128xbf16, #tpu.memory_space<vmem>>, vector<128x128xbf16>,
    return
  }
  func.func @transform_0(%arg0: i32) -> i32 {
    %c0_i32 = arith.constant 0 : i32
    %c0_i32_0 = arith.constant 0 : i32
    return %c0_i32 : i32
  }
  func.func @transform_1(%arg0: i32) -> (i32, i32) {
    %c0_i32 = arith.constant 0 : i32
    %c0_i32_0 = arith.constant 0 : i32
    return %arg0, %c0_i32 : i32, i32
  }
  func.func @transform_2(%arg0: i32) -> (i32, i32) {
    %c0_i32 = arith.constant 0 : i32
    %c0_i32_0 = arith.constant 0 : i32
    %c0_i32_1 = arith.constant 0 : i32
    return %c0_i32, %c0_i32_0 : i32, i32
  }
  func.func @transform_3(%arg0: i32) -> (i32, i32) {
    %c0_i32 = arith.constant 0 : i32
    %c0_i32_0 = arith.constant 0 : i32
    %c0_i32_1 = arith.constant 0 : i32
    return %c0_i32, %c0_i32_0 : i32, i32
  }
  func.func @transform_4(%arg0: i32) -> (i32, i32) {
    %c0_i32 = arith.constant 0 : i32
    %c0_i32_0 = arith.constant 0 : i32
    return %arg0, %c0_i32 : i32, i32
  }
}

module attributes {stable_mosaic.version = 11 : i64} {
  func.func @_flash_attn_kernel(%arg0: i32, %arg1: i32, %arg2: i32, %arg3: memref<3xf32, #tpu.memory_space<smem>>, %arg4: memref<1x32x128xbf16, #tpu.memory_space<vmem>>, %arg5: memref<1x16x256xbf16, #tpu.memory_space<vmem>>, %arg6: memref<1x32x128xf32, #tpu.memory_space<vmem>>, %arg7: memref<128x128xbf16, #tpu.memory_space<vmem>>, %arg8: memref<1x128xf32, #tpu.memory_space<vmem>>, %arg9: memref<1x32x128xf32, #tpu.memory_space<vmem>>, %arg10: memref<32x1xf32, #tpu.memory_space<vmem>>, %arg11: memref<32x1xf32, #tpu.memory_space<vmem>>, %arg12: memref<32x128xf32, #tpu.memory_space<vmem>>) attributes {dimension_semantics = [#tpu.dimension_semantics<parallel>, #tpu.dimension_semantics<parallel>, #tpu.dimension_semantics<arbitrary>], iteration_bounds = array<i64: 2, 2, 3>, scalar_prefetch = 0 : i64, scratch_operands = 3 : i64, tpu.core_type = #tpu.core_type<tc>, window_params = [{transform_indices = @transform_0, window_bounds = array<i64: 3>}, {transform_indices = @transform_1, window_bounds = array<i64: 1, 32, 128>}, {transform_indices = @transform_2, window_bounds = array<i64: 1, 16, 256>}, {transform_indices = @transform_3, window_bounds = array<i64: 1, 32, 128>}, {pipeline_mode = #tpu.pipeline_mode<synchronous>, transform_indices = @transform_4, window_bounds = array<i64: 128, 128>}, {pipeline_mode = #tpu.pipeline_mode<synchronous>, transform_indices = @transform_5, window_bounds = array<i64: 1, 128>}, {transform_indices = @transform_6, window_bounds = array<i64: 1, 32, 128>}]} {
    %c0_i32 = arith.constant 0 : i32
    %0 = arith.cmpi eq, %arg2, %c0_i32 : i32
    %1 = arith.extui %0 : i1 to i32
    %c0_i32_0 = arith.constant 0 : i32
    %2 = arith.cmpi ne, %1, %c0_i32_0 : i32
    scf.if %2 {
      %cst_23 = arith.constant 0xFF800000 : f32
      %44 = vector.broadcast %cst_23 : f32 to vector<32x1xf32>
      %c0_24 = arith.constant 0 : index
      %c0_25 = arith.constant 0 : index
      %45 = vector.load %arg10[%c0_24, %c0_25] : memref<32x1xf32, #tpu.memory_space<vmem>>, vector<32x1xf32>
      tpu.vector_store %arg10[%c0_24, %c0_25], %44 {strides = array<i32>} : memref<32x1xf32, #tpu.memory_space<vmem>>, vector<32x1xf32>,
      %cst_26 = arith.constant 0.000000e+00 : f32
      %46 = vector.broadcast %cst_26 : f32 to vector<32x1xf32>
      %c0_27 = arith.constant 0 : index
      %c0_28 = arith.constant 0 : index
      %47 = vector.load %arg11[%c0_27, %c0_28] : memref<32x1xf32, #tpu.memory_space<vmem>>, vector<32x1xf32>
      tpu.vector_store %arg11[%c0_27, %c0_28], %46 {strides = array<i32>} : memref<32x1xf32, #tpu.memory_space<vmem>>, vector<32x1xf32>,
      %cst_29 = arith.constant 0.000000e+00 : f32
      %48 = vector.broadcast %cst_29 : f32 to vector<32x128xf32>
      %c0_30 = arith.constant 0 : index
      %c0_31 = arith.constant 0 : index
      %49 = vector.load %arg12[%c0_30, %c0_31] : memref<32x128xf32, #tpu.memory_space<vmem>>, vector<32x128xf32>
      tpu.vector_store %arg12[%c0_30, %c0_31], %48 {strides = array<i32>} : memref<32x128xf32, #tpu.memory_space<vmem>>, vector<32x128xf32>,
    } else {
    }
    %c0 = arith.constant 0 : index
    %c0_1 = arith.constant 0 : index
    %c0_2 = arith.constant 0 : index
    %3 = vector.load %arg4[%c0, %c0_1, %c0_2] : memref<1x32x128xbf16, #tpu.memory_space<vmem>>, vector<1x32x128xbf16>
    %4 = vector.shape_cast %3 : vector<1x32x128xbf16> to vector<32x128xbf16>
    %c0_3 = arith.constant 0 : index
    %c0_4 = arith.constant 0 : index
    %c0_5 = arith.constant 0 : index
    %5 = vector.load %arg5[%c0_3, %c0_4, %c0_5] : memref<1x16x256xbf16, #tpu.memory_space<vmem>>, vector<1x16x256xbf16>
    %6 = vector.shape_cast %5 : vector<1x16x256xbf16> to vector<16x256xbf16>
    %7 = vector.extract_strided_slice %6 {offsets = [0, 0], sizes = [16, 128], strides = [1, 1]} : vector<16x256xbf16> to vector<16x128xbf16>
    %8 = vector.extract_strided_slice %6 {offsets = [0, 128], sizes = [16, 128], strides = [1, 1]} : vector<16x256xbf16> to vector<16x128xbf16>
    %cst = arith.constant dense<0.000000e+00> : vector<32x16xf32>
    %9 = tpu.matmul %4, %7, %cst {dimension_numbers = #tpu.dot_dimension_numbers<[1], [1], [0], [0], [0, 0, 1, 0], [], []>} : vector<32x128xbf16>, vector<16x128xbf16>, vector<32x16xf32> -> vector<32x16xf32>
    %c16_i32 = arith.constant 16 : i32
    %10 = arith.muli %arg2, %c16_i32 : i32
    %11 = tpu.iota {dimensions = array<i32: 1>} : vector<32x16xi32>
    %12 = vector.broadcast %10 : i32 to vector<32x16xi32>
    %13 = arith.addi %12, %11 : vector<32x16xi32>
    %c36_i32 = arith.constant 36 : i32
    %14 = vector.broadcast %c36_i32 : i32 to vector<32x16xi32>
    %15 = arith.cmpi slt, %13, %14 : vector<32x16xi32>
    %cst_6 = arith.constant -1.000000e+30 : f32
    %16 = vector.broadcast %cst_6 : f32 to vector<32x16xf32>
    %17 = arith.select %15, %9, %16 : vector<32x16xi1>, vector<32x16xf32>
    %c0_7 = arith.constant 0 : index
    %c0_8 = arith.constant 0 : index
    %18 = vector.load %arg10[%c0_7, %c0_8] : memref<32x1xf32, #tpu.memory_space<vmem>>, vector<32x1xf32>
    %cst_9 = arith.constant dense<0xFF800000> : vector<32xf32>
    %19 = vector.multi_reduction <maximumf>, %17, %cst_9 [1] : vector<32x16xf32> to vector<32xf32>
    %20 = vector.shape_cast %19 : vector<32xf32> to vector<32x1xf32>
    %21 = arith.maximumf %18, %20 : vector<32x1xf32>
    %22 = arith.subf %18, %21 : vector<32x1xf32>
    %23 = math.exp %22 : vector<32x1xf32>
    %24 = vector.broadcast %21 : vector<32x1xf32> to vector<32x16xf32>
    %25 = arith.subf %17, %24 : vector<32x16xf32>
    %26 = math.exp %25 : vector<32x16xf32>
    %c0_10 = arith.constant 0 : index
    %c0_11 = arith.constant 0 : index
    %27 = vector.load %arg11[%c0_10, %c0_11] : memref<32x1xf32, #tpu.memory_space<vmem>>, vector<32x1xf32>
    %28 = arith.mulf %23, %27 : vector<32x1xf32>
    %cst_12 = arith.constant dense<0.000000e+00> : vector<32xf32>
    %29 = vector.multi_reduction <add>, %26, %cst_12 [1] : vector<32x16xf32> to vector<32xf32>
    %30 = vector.shape_cast %29 : vector<32xf32> to vector<32x1xf32>
    %31 = arith.addf %28, %30 : vector<32x1xf32>
    %c0_13 = arith.constant 0 : index
    %c0_14 = arith.constant 0 : index
    %32 = vector.load %arg11[%c0_13, %c0_14] : memref<32x1xf32, #tpu.memory_space<vmem>>, vector<32x1xf32>
    tpu.vector_store %arg11[%c0_13, %c0_14], %31 {strides = array<i32>} : memref<32x1xf32, #tpu.memory_space<vmem>>, vector<32x1xf32>,
    %c0_15 = arith.constant 0 : index
    %c0_16 = arith.constant 0 : index
    %33 = vector.load %arg12[%c0_15, %c0_16] : memref<32x128xf32, #tpu.memory_space<vmem>>, vector<32x128xf32>
    %34 = vector.broadcast %23 : vector<32x1xf32> to vector<32x128xf32>
    %35 = arith.mulf %34, %33 : vector<32x128xf32>
    %36 = arith.truncf %26 : vector<32x16xf32> to vector<32x16xbf16>
    %cst_17 = arith.constant dense<0.000000e+00> : vector<32x128xf32>
    %37 = tpu.matmul %36, %8, %cst_17 {dimension_numbers = #tpu.dot_dimension_numbers<[1], [0], [0], [1], [0, 0, 1, 1], [], []>} : vector<32x16xbf16>, vector<16x128xbf16>, vector<32x128xf32> -> vector<32x128xf32>
    %38 = arith.addf %35, %37 : vector<32x128xf32>
    %c0_18 = arith.constant 0 : index
    %c0_19 = arith.constant 0 : index
    %39 = vector.load %arg12[%c0_18, %c0_19] : memref<32x128xf32, #tpu.memory_space<vmem>>, vector<32x128xf32>
    tpu.vector_store %arg12[%c0_18, %c0_19], %38 {strides = array<i32>} : memref<32x128xf32, #tpu.memory_space<vmem>>, vector<32x128xf32>,
    %c0_20 = arith.constant 0 : index
    %c0_21 = arith.constant 0 : index
    %40 = vector.load %arg10[%c0_20, %c0_21] : memref<32x1xf32, #tpu.memory_space<vmem>>, vector<32x1xf32>
    tpu.vector_store %arg10[%c0_20, %c0_21], %21 {strides = array<i32>} : memref<32x1xf32, #tpu.memory_space<vmem>>, vector<32x1xf32>,
    %c2_i32 = arith.constant 2 : i32
    %41 = arith.cmpi eq, %arg2, %c2_i32 : i32
    %42 = arith.extui %41 : i1 to i32
    %c0_i32_22 = arith.constant 0 : i32
    %43 = arith.cmpi ne, %42, %c0_i32_22 : i32
    scf.if %43 {
      %c0_23 = arith.constant 0 : index
      %44 = memref.load %arg3[%c0_23] : memref<3xf32, #tpu.memory_space<smem>>
      %c1 = arith.constant 1 : index
      %45 = memref.load %arg3[%c1] : memref<3xf32, #tpu.memory_space<smem>>
      %c2 = arith.constant 2 : index
      %46 = memref.load %arg3[%c2] : memref<3xf32, #tpu.memory_space<smem>>
      %c0_24 = arith.constant 0 : index
      %c0_25 = arith.constant 0 : index
      %47 = vector.load %arg12[%c0_24, %c0_25] : memref<32x128xf32, #tpu.memory_space<vmem>>, vector<32x128xf32>
      %c0_26 = arith.constant 0 : index
      %c0_27 = arith.constant 0 : index
      %48 = vector.load %arg11[%c0_26, %c0_27] : memref<32x1xf32, #tpu.memory_space<vmem>>, vector<32x1xf32>
      %49 = tpu.reciprocal %48 {approx = true} : vector<32x1xf32> -> vector<32x1xf32>
      %50 = vector.broadcast %49 : vector<32x1xf32> to vector<32x128xf32>
      %51 = arith.mulf %47, %50 : vector<32x128xf32>
      %cst_28 = arith.constant 1.000000e+00 : f32
      %52 = vector.broadcast %cst_28 : f32 to vector<32x128xf32>
      %53 = arith.addf %51, %52 : vector<32x128xf32>
      %54 = arith.subf %45, %44 : f32
      %55 = vector.broadcast %54 : f32 to vector<32x128xf32>
      %56 = arith.mulf %53, %55 : vector<32x128xf32>
      %cst_29 = arith.constant 5.000000e-01 : f32
      %57 = vector.broadcast %cst_29 : f32 to vector<32x128xf32>
      %58 = arith.mulf %56, %57 : vector<32x128xf32>
      %59 = vector.broadcast %44 : f32 to vector<32x128xf32>
      %60 = arith.addf %58, %59 : vector<32x128xf32>
      %61 = arith.truncf %60 : vector<32x128xf32> to vector<32x128xbf16>
      %c0_30 = arith.constant 0 : index
      %c0_31 = arith.constant 0 : index
      %62 = vector.load %arg7[%c0_30, %c0_31] : memref<128x128xbf16, #tpu.memory_space<vmem>>, vector<128x128xbf16>
      %cst_32 = arith.constant dense<0.000000e+00> : vector<32x128xf32>
      %63 = tpu.matmul %61, %62, %cst_32 {dimension_numbers = #tpu.dot_dimension_numbers<[1], [0], [0], [1], [0, 0, 1, 1], [], []>} : vector<32x128xbf16>, vector<128x128xbf16>, vector<32x128xf32> -> vector<32x128xf32>
      %c0_33 = arith.constant 0 : index
      %c0_34 = arith.constant 0 : index
      %64 = vector.load %arg8[%c0_33, %c0_34] : memref<1x128xf32, #tpu.memory_space<vmem>>, vector<1x128xf32>
      %65 = vector.broadcast %64 : vector<1x128xf32> to vector<32x128xf32>
      %66 = arith.addf %63, %65 : vector<32x128xf32>
      %67 = vector.broadcast %46 : f32 to vector<32x128xf32>
      %68 = arith.mulf %67, %66 : vector<32x128xf32>
      %c0_35 = arith.constant 0 : index
      %c0_36 = arith.constant 0 : index
      %c0_37 = arith.constant 0 : index
      %69 = vector.load %arg6[%c0_35, %c0_36, %c0_37] : memref<1x32x128xf32, #tpu.memory_space<vmem>>, vector<1x32x128xf32>
      %70 = vector.shape_cast %69 : vector<1x32x128xf32> to vector<32x128xf32>
      %71 = arith.addf %68, %70 : vector<32x128xf32>
      %c0_38 = arith.constant 0 : index
      %c0_39 = arith.constant 0 : index
      %c0_40 = arith.constant 0 : index
      %72 = vector.load %arg9[%c0_38, %c0_39, %c0_40] : memref<1x32x128xf32, #tpu.memory_space<vmem>>, vector<1x32x128xf32>
      %73 = vector.shape_cast %72 : vector<1x32x128xf32> to vector<32x128xf32>
      %74 = vector.shape_cast %71 : vector<32x128xf32> to vector<1x32x128xf32>
      tpu.vector_store %arg9[%c0_38, %c0_39, %c0_40], %74 {strides = array<i32>} : memref<1x32x128xf32, #tpu.memory_space<vmem>>, vector<1x32x128xf32>,
    } else {
    }
    return
  }
  func.func @transform_0(%arg0: i32, %arg1: i32, %arg2: i32) -> i32 {
    %c0_i32 = arith.constant 0 : i32
    %c0_i32_0 = arith.constant 0 : i32
    return %c0_i32 : i32
  }
  func.func @transform_1(%arg0: i32, %arg1: i32, %arg2: i32) -> (i32, i32, i32) {
    %c0_i32 = arith.constant 0 : i32
    %c0_i32_0 = arith.constant 0 : i32
    return %arg0, %arg1, %c0_i32 : i32, i32, i32
  }
  func.func @transform_2(%arg0: i32, %arg1: i32, %arg2: i32) -> (i32, i32, i32) {
    %c0_i32 = arith.constant 0 : i32
    %c0_i32_0 = arith.constant 0 : i32
    return %arg0, %arg2, %c0_i32 : i32, i32, i32
  }
  func.func @transform_3(%arg0: i32, %arg1: i32, %arg2: i32) -> (i32, i32, i32) {
    %c0_i32 = arith.constant 0 : i32
    %c0_i32_0 = arith.constant 0 : i32
    return %arg0, %arg1, %c0_i32 : i32, i32, i32
  }
  func.func @transform_4(%arg0: i32, %arg1: i32, %arg2: i32) -> (i32, i32) {
    %c0_i32 = arith.constant 0 : i32
    %c0_i32_0 = arith.constant 0 : i32
    %c0_i32_1 = arith.constant 0 : i32
    return %c0_i32, %c0_i32_0 : i32, i32
  }
  func.func @transform_5(%arg0: i32, %arg1: i32, %arg2: i32) -> (i32, i32) {
    %c0_i32 = arith.constant 0 : i32
    %c0_i32_0 = arith.constant 0 : i32
    %c0_i32_1 = arith.constant 0 : i32
    return %c0_i32, %c0_i32_0 : i32, i32
  }
  func.func @transform_6(%arg0: i32, %arg1: i32, %arg2: i32) -> (i32, i32, i32) {
    %c0_i32 = arith.constant 0 : i32
    %c0_i32_0 = arith.constant 0 : i32
    return %arg0, %arg1, %c0_i32 : i32, i32, i32
  }
}

</mosaic_0001>

<bundles_post_ra>
// kernel: self_attention_forward.3
= control target key start
LH: loop header
LB: loop body
LE: loop exit
PB: predicated region body
PF: predicated region fallthrough
CT: control target
= control target key end

     0   :  { %9 = vsyncpa [#allocation3], 0  ;;  %s372_s18 = smov [#allocation2]   ;;  %s518_s0 = inlined_call_operand.vmem [shape: f32[2], index: 0, kind: input, shape index: {}]   ;;  %s519_s1 = inlined_call_operand.vmem [shape: f32[128,128], index: 1, kind: input, shape index: {}]   ;;  %s520_s2 = inlined_call_operand.vmem [shape: bf16[128,128], index: 2, kind: input, shape index: {}]   ;;  %s521_s3 = inlined_call_operand.vmem [shape: f32[1,128], index: 3, kind: input, shape index: {}]   ;;  %s522_s4 = inlined_call_operand.vmem [shape: bf16[128,128], index: 4, kind: output, shape index: {}]  }
   0x1   :  { %s15_s17 = sshll.u32 %s518_s0, 4  ;;  %s16_s17 = int_to_ptr.vmem [resolvable:$true] %s15_s17 }
   0x2   :  { %18 = dma.vmem_to_smem %s16_s17, 16, %s372_s18, [#allocation3]  }
   0x3   :  { %370 = dma.done.wait [#allocation3], 16  }
   0x4   :  { %371 = vsyncadd [#allocation3], 4294967280 }
   0x5   :  { %29 = sfence }
   0x6   :  { %v284_v0 = vld [vmem:[%s520_s2 + $0x38] sm:$0xff]  ;;  %v283_v1 = vld [vmem:[%s520_s2 + $0x30] sm:$0xff]  ;;  %v282_v2 = vld [vmem:[%s520_s2 + $0x28] sm:$0xff]  ;;  %s30_s24 = sld [smem:[#allocation2]] }
   0x7   :  { %158 = vmatpush.bf16.msra.mxu0 %v284_v0  ;;  %332 = vmatpush.bf16.msra.mxu1 %v284_v0  ;;  %v281_v3 = vld [vmem:[%s520_s2 + $0x20] sm:$0xff]  ;;  %s244_s27 = sld [smem:[#allocation2 + $0x1]]  ;;  %v280_v4 = vld [vmem:[%s520_s2 + $0x18] sm:$0xff]  ;;  %v279_v5 = vld [vmem:[%s520_s2 + $0x10] sm:$0xff] }
   0x8   :  { %333 = vmatpush.bf16.msra.mxu2 %v284_v0  ;;  %334 = vmatpush.bf16.msra.mxu3 %v284_v0  ;;  %v32_v6 = vld [vmem:[%s519_s1] sm:$0xff]  ;;  %v33_v7 = vld [vmem:[%s519_s1 + $0x8] sm:$0xff]  ;;  %v34_v38 = vld [vmem:[%s519_s1 + $0x10] sm:$0xff] }
   0x9   :  { %v36_v9 = vld [vmem:[%s519_s1 + $0x20] sm:$0xff]  ;;  %v37_v10 = vld [vmem:[%s519_s1 + $0x28] sm:$0xff]  ;;  %v35_v39 = vld [vmem:[%s519_s1 + $0x18] sm:$0xff] }
   0xa   :  { %v40_v11 = vld [vmem:[%s519_s1 + $0x40] sm:$0xff]  ;;  %v41_v12 = vld [vmem:[%s519_s1 + $0x48] sm:$0xff]  ;;  %v38_v40 = vld [vmem:[%s519_s1 + $0x30] sm:$0xff] }
   0xb   :  { %159 = vmatpush.bf16.msra.mxu0 %v283_v1  ;;  %335 = vmatpush.bf16.msra.mxu1 %v283_v1  ;;  %v44_v13 = vld [vmem:[%s519_s1 + $0x60] sm:$0xff]  ;;  %v45_v14 = vld [vmem:[%s519_s1 + $0x68] sm:$0xff]  ;;  %v39_v41 = vld [vmem:[%s519_s1 + $0x38] sm:$0xff] }
   0xc   :  { %336 = vmatpush.bf16.msra.mxu2 %v283_v1  ;;  %337 = vmatpush.bf16.msra.mxu3 %v283_v1  ;;  %v425_v8 = vstv %s30_s24  ;;  %v278_v21 = vld [vmem:[%s520_s2 + $0x8] sm:$0xff]  ;;  %v277_v30 = vld [vmem:[%s520_s2] sm:$0xff]  ;;  %v42_v42 = vld [vmem:[%s519_s1 + $0x50] sm:$0xff] }
   0xd   :  { %v49_v15 = vmul.f32 %v425_v8, %v32_v6  ;;  %v50_v16 = vmul.f32 %v425_v8, %v33_v7  ;;  %v65_v17 = vstv %s244_s27  ;;  %v53_v18 = vmul.f32 %v425_v8, %v36_v9  ;;  %v43_v43 = vld [vmem:[%s519_s1 + $0x58] sm:$0xff]  ;;  %v46_v44 = vld [vmem:[%s519_s1 + $0x70] sm:$0xff] }
   0xe   :  { %v54_v19 = vmul.f32 %v425_v8, %v37_v10  ;;  %v57_v20 = vmul.f32 %v425_v8, %v40_v11  ;;  %v58_v22 = vmul.f32 %v425_v8, %v41_v12  ;;  %v61_v23 = vmul.f32 %v425_v8, %v44_v13  ;;  %v47_v45 = vld [vmem:[%s519_s1 + $0x78] sm:$0xff] }
   0xf   :  { %160 = vmatpush.bf16.msra.mxu0 %v282_v2  ;;  %338 = vmatpush.bf16.msra.mxu1 %v282_v2  ;;  %v62_v24 = vmul.f32 %v425_v8, %v45_v14  ;;  %v66_v25 = vadd.f32 %v65_v17, %v49_v15  ;;  %v67_v26 = vadd.f32 %v65_v17, %v50_v16 }
  0x10   :  { %339 = vmatpush.bf16.msra.mxu2 %v282_v2  ;;  %340 = vmatpush.bf16.msra.mxu3 %v282_v2  ;;  %v70_v27 = vadd.f32 %v65_v17, %v53_v18  ;;  %v71_v28 = vadd.f32 %v65_v17, %v54_v19  ;;  %v74_v29 = vadd.f32 %v65_v17, %v57_v20 }
  0x11   :  { %v75_v31 = vadd.f32 %v65_v17, %v58_v22  ;;  %v78_v32 = vadd.f32 %v65_v17, %v61_v23  ;;  %v79_v33 = vadd.f32 %v65_v17, %v62_v24  ;;  %v82_v34 = vpack.c.bf16 %v67_v26, %v66_v25 }
  0x12   :  { %v84_v35 = vpack.c.bf16 %v71_v28, %v70_v27  ;;  %v51_v46 = vmul.f32 %v425_v8, %v34_v38  ;;  %v52_v47 = vmul.f32 %v425_v8, %v35_v39  ;;  %v55_v48 = vmul.f32 %v425_v8, %v38_v40 }
  0x13   :  { %161 = vmatpush.bf16.msra.mxu0 %v281_v3  ;;  %341 = vmatpush.bf16.msra.mxu1 %v281_v3  ;;  %v86_v36 = vpack.c.bf16 %v75_v31, %v74_v29  ;;  %v88_v37 = vpack.c.bf16 %v79_v33, %v78_v32  ;;  %v56_v49 = vmul.f32 %v425_v8, %v39_v41 }
  0x14   :  { %342 = vmatpush.bf16.msra.mxu2 %v281_v3  ;;  %343 = vmatpush.bf16.msra.mxu3 %v281_v3  ;;  %v59_v50 = vmul.f32 %v425_v8, %v42_v42  ;;  %v60_v51 = vmul.f32 %v425_v8, %v43_v43  ;;  %v63_v52 = vmul.f32 %v425_v8, %v46_v44 }
  0x15   :  { %v64_v53 = vmul.f32 %v425_v8, %v47_v45  ;;  %v68_v54 = vadd.f32 %v65_v17, %v51_v46  ;;  %v69_v55 = vadd.f32 %v65_v17, %v52_v47  ;;  %v72_v56 = vadd.f32 %v65_v17, %v55_v48 }
  0x16   :  { %v73_v57 = vadd.f32 %v65_v17, %v56_v49  ;;  %v76_v58 = vadd.f32 %v65_v17, %v59_v50  ;;  %v77_v59 = vadd.f32 %v65_v17, %v60_v51  ;;  %v80_v60 = vadd.f32 %v65_v17, %v63_v52 }
  0x17   :  { %162 = vmatpush.bf16.msra.mxu0 %v280_v4  ;;  %344 = vmatpush.bf16.msra.mxu1 %v280_v4  ;;  %v81_v61 = vadd.f32 %v65_v17, %v64_v53  ;;  %v83_v62 = vpack.c.bf16 %v69_v55, %v68_v54 }
  0x18   :  { %345 = vmatpush.bf16.msra.mxu2 %v280_v4  ;;  %346 = vmatpush.bf16.msra.mxu3 %v280_v4  ;;  %v85_v63 = vpack.c.bf16 %v73_v57, %v72_v56  ;;  %v87_v0 = vpack.c.bf16 %v77_v59, %v76_v58  ;;  %v357_v4 = vld [vmem:[%s521_s3] ss:$0 sm:$0xff] }
  0x19   :  { %v89_v1 = vpack.c.bf16 %v81_v61, %v80_v60 }
  0x1b   :  { %163 = vmatpush.bf16.msra.mxu0 %v279_v5  ;;  %347 = vmatpush.bf16.msra.mxu1 %v279_v5 }
  0x1c   :  { %348 = vmatpush.bf16.msra.mxu2 %v279_v5  ;;  %349 = vmatpush.bf16.msra.mxu3 %v279_v5 }
  0x1f   :  { %164 = vmatpush.bf16.msra.mxu0 %v278_v21  ;;  %350 = vmatpush.bf16.msra.mxu1 %v278_v21 }
  0x20   :  { %351 = vmatpush.bf16.msra.mxu2 %v278_v21  ;;  %352 = vmatpush.bf16.msra.mxu3 %v278_v21 }
  0x23   :  { %165 = vmatpush.bf16.msra.mxu0 %v277_v30  ;;  %353 = vmatpush.bf16.msra.mxu1 %v277_v30 }
  0x24   :  { %354 = vmatpush.bf16.msra.mxu2 %v277_v30  ;;  %355 = vmatpush.bf16.msra.mxu3 %v277_v30 }
  0x26   :  { %166 = vmatmul.bf16.vlgmr.msra.gmra.mxu0 %v82_v34  ;;  %176 = vmatmul.bf16.vlgmr.msra.gmra.mxu1 %v84_v35 }
  0x27   :  { %186 = vmatmul.bf16.vlgmr.msra.gmra.mxu2 %v86_v36  ;;  %196 = vmatmul.bf16.vlgmr.msra.gmra.mxu3 %v88_v37 }
  0x36   :  { %171 = vmatmul.bf16.gmra.mxu0 %v83_v62  ;;  %181 = vmatmul.bf16.gmra.mxu1 %v85_v63 }
  0x37   :  { %191 = vmatmul.bf16.gmra.mxu2 %v87_v0  ;;  %201 = vmatmul.bf16.gmra.mxu3 %v89_v1 }
  0xa3   :  { %v167_v2 = vpop.f32.mrf.mxu0  ;;  %v177_v3 = vpop.f32.mrf.mxu1 }
  0xa4   :  { %v168_v9 = vadd.f32 %v357_v4, %v167_v2  ;;  %v178_v10 = vadd.f32 %v357_v4, %v177_v3 }
  0xaa   :  { %v187_v5 = vpop.f32.mrf.mxu2  ;;  %v197_v6 = vpop.f32.mrf.mxu3 }
  0xab   :  { %v169_v7 = vpop.f32.mrf.mxu0  ;;  %v179_v8 = vpop.f32.mrf.mxu1  ;;  %v188_v17 = vadd.f32 %v357_v4, %v187_v5  ;;  %v198_v18 = vadd.f32 %v357_v4, %v197_v6 }
  0xac   :  { %v170_v11 = vadd.f32 %v357_v4, %v169_v7  ;;  %v180_v12 = vadd.f32 %v357_v4, %v179_v8 }
  0xae   :  { %v288_v13 = vpack.c.bf16 %v170_v11, %v168_v9  ;;  %v298_v14 = vpack.c.bf16 %v180_v12, %v178_v10 }
  0xb0   :  { %289 = vst [vmem:[%s522_s4] sm:$0xff] %v288_v13  }
  0xb1   :  { %326 = vst [vmem:[%s522_s4 + $0x10] sm:$0xff] %v298_v14  }
  0xb2   :  { %v189_v15 = vpop.f32.mrf.mxu2  ;;  %v199_v16 = vpop.f32.mrf.mxu3 }
  0xb3   :  { %v190_v19 = vadd.f32 %v357_v4, %v189_v15  ;;  %v200_v20 = vadd.f32 %v357_v4, %v199_v16  ;;  %v172_v21 = vpop.f32.mrf.mxu0  ;;  %v182_v22 = vpop.f32.mrf.mxu1 }
  0xb4   :  { %v173_v29 = vadd.f32 %v357_v4, %v172_v21  ;;  %v183_v30 = vadd.f32 %v357_v4, %v182_v22 }
  0xb5   :  { %v308_v23 = vpack.c.bf16 %v190_v19, %v188_v17  ;;  %v318_v24 = vpack.c.bf16 %v200_v20, %v198_v18 }
  0xb7   :  { %328 = vst [vmem:[%s522_s4 + $0x20] sm:$0xff] %v308_v23  }
  0xb8   :  { %330 = vst [vmem:[%s522_s4 + $0x30] sm:$0xff] %v318_v24  }
  0xba   :  { %v192_v25 = vpop.f32.mrf.mxu2  ;;  %v202_v26 = vpop.f32.mrf.mxu3 }
  0xbb   :  { %v174_v27 = vpop.f32.mrf.mxu0  ;;  %v184_v28 = vpop.f32.mrf.mxu1  ;;  %v193_v37 = vadd.f32 %v357_v4, %v192_v25  ;;  %v203_v38 = vadd.f32 %v357_v4, %v202_v26 }
  0xbc   :  { %v175_v31 = vadd.f32 %v357_v4, %v174_v27  ;;  %v185_v32 = vadd.f32 %v357_v4, %v184_v28 }
  0xbe   :  { %v293_v33 = vpack.c.bf16 %v175_v31, %v173_v29  ;;  %v303_v34 = vpack.c.bf16 %v185_v32, %v183_v30 }
  0xc0   :  { %325 = vst [vmem:[%s522_s4 + $0x8] sm:$0xff] %v293_v33  }
  0xc1   :  { %327 = vst [vmem:[%s522_s4 + $0x18] sm:$0xff] %v303_v34  }
  0xc2   :  { %v194_v35 = vpop.f32.mrf.mxu2  ;;  %v204_v36 = vpop.f32.mrf.mxu3 }
  0xc3   :  { %v195_v39 = vadd.f32 %v357_v4, %v194_v35  ;;  %v205_v40 = vadd.f32 %v357_v4, %v204_v36 }
  0xc5   :  { %v313_v41 = vpack.c.bf16 %v195_v39, %v193_v37  ;;  %v323_v42 = vpack.c.bf16 %v205_v40, %v203_v38 }
  0xc7   :  { %329 = vst [vmem:[%s522_s4 + $0x28] sm:$0xff] %v313_v41  }
  0xc8   :  { %331 = vst [vmem:[%s522_s4 + $0x38] sm:$0xff] %v323_v42  }
  0xc9   :  { %243 = vsyncpa [#allocation3], 1 }

// kernel: self_attention_forward.4
= control target key start
LH: loop header
LB: loop body
LE: loop exit
PB: predicated region body
PF: predicated region fallthrough
CT: control target
= control target key end

     0   :  { %9 = vsyncpa [#allocation3], 0  ;;  %s637_s15 = smov 0   ;;  %s770_s0 = inlined_call_operand.vmem [shape: f32[2], index: 0, kind: input, shape index: {}]   ;;  %s771_s1 = inlined_call_operand.vmem [shape: f32[96,128], index: 1, kind: input, shape index: {}]   ;;  %s772_s2 = inlined_call_operand.vmem [shape: bf16[128,256], index: 2, kind: input, shape index: {}]   ;;  %s773_s3 = inlined_call_operand.vmem [shape: f32[1,256], index: 3, kind: input, shape index: {}]   ;;  %s774_s4 = inlined_call_operand.vmem [shape: bf16[96,256], index: 4, kind: output, shape index: {}]  }
   0x1 LB: > { %s453_s16 = sadd.s32 4294967295, %s609_s15   ;;  %p455_p0 = scmp.ge.s32.totalorder %s609_s15, 1  ;;  %s609_s15 = sphi %s637_s15, %s15_s15  }
   0x2   : > { %p135_p1 = scmp.lt.s32.totalorder %s609_s15, 4  ;;  %s147_s19 = sshll.u32 %s770_s0, 4  ;;  %s148_s19 = int_to_ptr.vmem [resolvable:$true] %s147_s19 }
   0x3   : > { %p573_p3 = scmp.eq.s32.totalorder %s453_s16, 0  ;;  %s611_s20 = smov [#allocation2]  }
   0x4   : > { %p136_p2 = pnand %p455_p0, %p135_p1 }
   0x6   : > { %p569_p4 = pneg %p136_p2  ;;  %175 = sbr.rel (%p136_p2) target bundleno = 194 (0xc2), region = 36 }
   0x8   : > { %p570_p5 = pnand %p573_p3, %p569_p4 }
   0xa   : > { %572 = dma.vmem_to_smem (!%p570_p5), %s148_s19, 16, %s611_s20, [#allocation3]  }
   0xb   : > { %604 = dma.done.wait (%p573_p3), [#allocation3], 16  }
   0xc   : > { %606 = vsyncadd (%p573_p3), [#allocation3], 4294967280 }
   0xd   : > { %182 = sfence }
   0xe   : > { %v524_v0 = vld [vmem:[%s772_s2 + $0x70] sm:$0xf]  ;;  %v548_v1 = vld [vmem:[%s772_s2 + $0x74] sm:$0xf0]  ;;  %v547_v2 = vld [vmem:[%s772_s2 + $0x74] sm:$0xf] }
   0xf   : > { %v525_v3 = vor.u32 %v548_v1, %v524_v0  ;;  %v526_v4 = vld [vmem:[%s772_s2 + $0x78] sm:$0xf0]  ;;  %v516_v5 = vld [vmem:[%s772_s2 + $0x60] sm:$0xf]  ;;  %v546_v6 = vld [vmem:[%s772_s2 + $0x64] sm:$0xf0] }
  0x10   : > { %v529_v7 = vor.u32 %v547_v2, %v526_v4  ;;  %v545_v8 = vld [vmem:[%s772_s2 + $0x64] sm:$0xf]  ;;  %v518_v9 = vld [vmem:[%s772_s2 + $0x68] sm:$0xf0]  ;;  %v517_v10 = vor.u32 %v546_v6, %v516_v5  ;;  %v508_v12 = vld [vmem:[%s772_s2 + $0x50] sm:$0xf] }
  0x11   : > { %337 = vmatpush.bf16.msra.mxu0 %v525_v3  ;;  %549 = vmatpush.bf16.msra.mxu2 %v525_v3  ;;  %v521_v11 = vor.u32 %v545_v8, %v518_v9  ;;  %v544_v13 = vld [vmem:[%s772_s2 + $0x54] sm:$0xf0]  ;;  %v543_v14 = vld [vmem:[%s772_s2 + $0x54] sm:$0xf]  ;;  %v510_v15 = vld [vmem:[%s772_s2 + $0x58] sm:$0xf0] }
  0x12   : > { %356 = vmatpush.bf16.msra.mxu1 %v529_v7  ;;  %557 = vmatpush.bf16.msra.mxu3 %v529_v7  ;;  %v509_v16 = vor.u32 %v544_v13, %v508_v12  ;;  %v513_v17 = vor.u32 %v543_v14, %v510_v15  ;;  %v500_v18 = vld [vmem:[%s772_s2 + $0x40] sm:$0xf]  ;;  %v542_v19 = vld [vmem:[%s772_s2 + $0x44] sm:$0xf0]  ;;  %v541_v20 = vld [vmem:[%s772_s2 + $0x44] sm:$0xf] }
  0x13   : > { %v502_v21 = vld [vmem:[%s772_s2 + $0x48] sm:$0xf0]  ;;  %s460_s29 = sshll.u32 %s453_s16, 2  ;;  %v501_v22 = vor.u32 %v542_v19, %v500_v18  ;;  %s217_s30 = sld [smem:[#allocation2]]  ;;  %v492_v24 = vld [vmem:[%s772_s2 + $0x30] sm:$0xf] }
  0x14   : > { %p205_p6 = scmp.lt.s32.totalorder %s460_s29, 11  ;;  %v505_v23 = vor.u32 %v541_v20, %v502_v21  ;;  %v540_v25 = vld [vmem:[%s772_s2 + $0x34] sm:$0xf0]  ;;  %v539_v26 = vld [vmem:[%s772_s2 + $0x34] sm:$0xf]  ;;  %s715_s13 = sld [smem:[#allocation2 + $0x1]] }
  0x15   : > { %338 = vmatpush.bf16.msra.mxu0 %v517_v10  ;;  %550 = vmatpush.bf16.msra.mxu2 %v517_v10  ;;  %v494_v27 = vld [vmem:[%s772_s2 + $0x38] sm:$0xf0]  ;;  %v493_v28 = vor.u32 %v540_v25, %v492_v24  ;;  %v484_v30 = vld [vmem:[%s772_s2 + $0x20] sm:$0xf]  ;;  %v538_v31 = vld [vmem:[%s772_s2 + $0x24] sm:$0xf0] }
  0x16   : > { %357 = vmatpush.bf16.msra.mxu1 %v521_v11  ;;  %558 = vmatpush.bf16.msra.mxu3 %v521_v11  ;;  %s776_s29 = smov (!%p205_p6, %s460_s29), 11  ;;  %v497_v29 = vor.u32 %v539_v26, %v494_v27  ;;  %v537_v32 = vld [vmem:[%s772_s2 + $0x24] sm:$0xf]  ;;  %v486_v33 = vld [vmem:[%s772_s2 + $0x28] sm:$0xf0]  ;;  %v485_v35 = vor.u32 %v538_v31, %v484_v30 }
  0x17   : > { %s461_s12 = sshll.u32 %s776_s29, 3  ;;  %v489_v40 = vor.u32 %v537_v32, %v486_v33  ;;  %v476_v41 = vld [vmem:[%s772_s2 + $0x10] sm:$0xf]  ;;  %v536_v42 = vld [vmem:[%s772_s2 + $0x14] sm:$0xf0] }
  0x18   : > { %s208_s22 = scalar_lea.vmem %s771_s1, %s461_s12  ;;  %v535_v43 = vld [vmem:[%s772_s2 + $0x14] sm:$0xf]  ;;  %v478_v44 = vld [vmem:[%s772_s2 + $0x18] sm:$0xf0]  ;;  %v477_v49 = vor.u32 %v536_v42, %v476_v41  ;;  %v468_v52 = vld [vmem:[%s772_s2] sm:$0xf]  ;;  %s215_s24 = scalar_lea.vmem %s774_s4, %s461_s12 }
  0x19   : > { %339 = vmatpush.bf16.msra.mxu0 %v509_v16  ;;  %551 = vmatpush.bf16.msra.mxu2 %v509_v16  ;;  %v219_v34 = vld [vmem:[%s208_s22] sm:$0xff]  ;;  %v220_v36 = vld [vmem:[%s208_s22 + $0x8] sm:$0xff]  ;;  %v223_v37 = vstv %s217_s30  ;;  %v221_v38 = vld [vmem:[%s208_s22 + $0x10] sm:$0xff]  ;;  %v481_v51 = vor.u32 %v535_v43, %v478_v44 }
  0x1a   : > { %358 = vmatpush.bf16.msra.mxu1 %v513_v17  ;;  %559 = vmatpush.bf16.msra.mxu3 %v513_v17  ;;  %v222_v39 = vld [vmem:[%s208_s22 + $0x18] sm:$0xff]  ;;  %v224_v45 = vmul.f32 %v223_v37, %v219_v34  ;;  %v225_v46 = vmul.f32 %v223_v37, %v220_v36  ;;  %v226_v47 = vmul.f32 %v223_v37, %v221_v38  ;;  %v228_v50 = vstv %s715_s13  ;;  %v534_v53 = vld [vmem:[%s772_s2 + $0x4] sm:$0xf0]  ;;  %v533_v54 = vld [vmem:[%s772_s2 + $0x4] sm:$0xf] }
  0x1b   : > { %v227_v48 = vmul.f32 %v223_v37, %v222_v39  ;;  %v470_v55 = vld [vmem:[%s772_s2 + $0x8] sm:$0xf0]  ;;  %v469_v60 = vor.u32 %v534_v53, %v468_v52  ;;  %v251_v0 = vld [vmem:[%s773_s3] sm:$0x3] }
  0x1c   : > { %v229_v56 = vadd.f32 %v228_v50, %v224_v45  ;;  %v230_v57 = vadd.f32 %v228_v50, %v225_v46  ;;  %v231_v58 = vadd.f32 %v228_v50, %v226_v47  ;;  %v473_v61 = vor.u32 %v533_v54, %v470_v55 }
  0x1d   : > { %340 = vmatpush.bf16.msra.mxu0 %v501_v22  ;;  %552 = vmatpush.bf16.msra.mxu2 %v501_v22  ;;  %v232_v59 = vadd.f32 %v228_v50, %v227_v48  ;;  %v253_v1 = vperm.slane %v251_v0, 0  ;;  %v254_v2 = vperm.slane %v251_v0, 1 }
  0x1e   : > { %359 = vmatpush.bf16.msra.mxu1 %v505_v23  ;;  %560 = vmatpush.bf16.msra.mxu3 %v505_v23  ;;  %v233_v62 = vpack.c.bf16 %v230_v57, %v229_v56 }
  0x1f   : > { %v234_v63 = vpack.c.bf16 %v232_v59, %v231_v58 }
  0x21   : > { %341 = vmatpush.bf16.msra.mxu0 %v493_v28  ;;  %553 = vmatpush.bf16.msra.mxu2 %v493_v28 }
  0x22   : > { %360 = vmatpush.bf16.msra.mxu1 %v497_v29  ;;  %561 = vmatpush.bf16.msra.mxu3 %v497_v29 }
  0x25   : > { %342 = vmatpush.bf16.msra.mxu0 %v485_v35  ;;  %554 = vmatpush.bf16.msra.mxu2 %v485_v35 }
  0x26   : > { %361 = vmatpush.bf16.msra.mxu1 %v489_v40  ;;  %562 = vmatpush.bf16.msra.mxu3 %v489_v40 }
  0x29   : > { %343 = vmatpush.bf16.msra.mxu0 %v477_v49  ;;  %555 = vmatpush.bf16.msra.mxu2 %v477_v49 }
  0x2a   : > { %362 = vmatpush.bf16.msra.mxu1 %v481_v51  ;;  %563 = vmatpush.bf16.msra.mxu3 %v481_v51 }
  0x2d   : > { %344 = vmatpush.bf16.msra.mxu0 %v469_v60  ;;  %556 = vmatpush.bf16.msra.mxu2 %v469_v60 }
  0x2e   : > { %363 = vmatpush.bf16.msra.mxu1 %v473_v61  ;;  %564 = vmatpush.bf16.msra.mxu3 %v473_v61 }
  0x30   : > { %345 = vmatmul.bf16.vlgmr.msra.gmra.mxu0 %v233_v62  ;;  %350 = vmatmul.bf16.vlgmr.msra.gmra.mxu2 %v234_v63 }
  0x31   : > { %364 = vmatmul.bf16.vlgmr.msra.gmra.mxu1 %v233_v62  ;;  %369 = vmatmul.bf16.vlgmr.msra.gmra.mxu3 %v234_v63 }
  0xad   : > { %v346_v3 = vpop.f32.mrf.mxu0 }
  0xae   : > { %v347_v4 = vadd.f32 %v346_v3, %v253_v1  ;;  %v365_v5 = vpop.f32.mrf.mxu1 }
  0xaf   : > { %v366_v6 = vadd.f32 %v365_v5, %v254_v2 }
  0xb1   : > { %v375_v7 = vpack.c.bf16 %v366_v6, %v347_v4 }
  0xb3   : > { %379 = vst [vmem:[%s215_s24] sm:$0xff] %v375_v7  ;;  %v351_v8 = vpop.f32.mrf.mxu2 }
  0xb4   : > { %v352_v9 = vadd.f32 %v351_v8, %v253_v1  ;;  %v370_v10 = vpop.f32.mrf.mxu3 }
  0xb5   : > { %v371_v11 = vadd.f32 %v370_v10, %v254_v2  ;;  %v348_v12 = vpop.f32.mrf.mxu0 }
  0xb6   : > { %v349_v13 = vadd.f32 %v348_v12, %v253_v1  ;;  %v367_v14 = vpop.f32.mrf.mxu1 }
  0xb7   : > { %v377_v15 = vpack.c.bf16 %v371_v11, %v352_v9  ;;  %v368_v16 = vadd.f32 %v367_v14, %v254_v2 }
  0xb9   : > { %381 = vst [vmem:[%s215_s24 + $0x10] sm:$0xff] %v377_v15  ;;  %v376_v17 = vpack.c.bf16 %v368_v16, %v349_v13 }
  0xbb   : > { %380 = vst [vmem:[%s215_s24 + $0x8] sm:$0xff] %v376_v17  ;;  %v353_v18 = vpop.f32.mrf.mxu2 }
  0xbc   : > { %v354_v19 = vadd.f32 %v353_v18, %v253_v1  ;;  %v372_v20 = vpop.f32.mrf.mxu3 }
  0xbd   : > { %v373_v21 = vadd.f32 %v372_v20, %v254_v2 }
  0xbf   : > { %v378_v22 = vpack.c.bf16 %v373_v21, %v354_v19 }
  0xc1   : > { %382 = vst [vmem:[%s215_s24 + $0x18] sm:$0xff] %v378_v22 }
  0xc2 PF: > { %s15_s15 = sadd.s32 1, %s609_s15  }
  0xc3   : > { %p12_p7 = scmp.ge.s32.totalorder %s15_s15, 5  }
  0xc5   :  { %14 = sbr.rel (!%p12_p7) target bundleno = 1 (0x1), region = 71 }
  0xca   :  { %407 = vsyncpa [#allocation3], 1 }
  0xcb   :  { %409 = vsyncpa [#allocation3 + $0x1], 1 }

// kernel: self_attention_forward.5
= control target key start
LH: loop header
LB: loop body
LE: loop exit
PB: predicated region body
PF: predicated region fallthrough
CT: control target
= control target key end

     0   :  { %s1442_s0 = inlined_call_operand.vmem [shape: f32[3], index: 0, kind: input, shape index: {}]   ;;  %s1443_s1 = inlined_call_operand.vmem [shape: bf16[2,64,128], index: 1, kind: input, shape index: {}]   ;;  %s1444_s2 = inlined_call_operand.vmem [shape: bf16[2,48,256], index: 2, kind: input, shape index: {}]   ;;  %s1445_s3 = inlined_call_operand.vmem [shape: f32[2,64,128], index: 3, kind: input, shape index: {}]   ;;  %s1446_s4 = inlined_call_operand.vmem [shape: bf16[128,128], index: 4, kind: input, shape index: {}]   ;;  %s1447_s5 = inlined_call_operand.vmem [shape: f32[1,128], index: 5, kind: input, shape index: {}]   ;;  %s1448_s6 = inlined_call_operand.vmem [shape: f32[2,64,128], index: 6, kind: output, shape index: {}]  }
   0x1   :  { %1449 = sst [smem:[#allocation9_spill]] %s1442_s0 }
   0x2   :  { %11 = vsyncpa [#allocation6], 0  ;;  %s1253_s21 = smov 0   ;;  %s1255_s22 = smov 0  }
   0x3   :  { %s1257_s23 = smov 0   ;;  %s1259_s24 = smov 0  }
   0x4   :  { %s1261_s25 = smov 0   ;;  %s1263_s26 = smov 0  }
   0x5   :  { %s1265_s27 = smov 0  }
   0x6 LB: > { %s938_s28 = sadd.s32 4294967295, %s1211_s27   ;;  %s29_s29 = sadd.s32 1, %s1199_s24  ;;  %s1211_s27 = sphi %s1265_s27, %s17_s27   ;;  %s1207_s26 = sphi %s1263_s26, %s1459_s26   ;;  %s1203_s25 = sphi %s1261_s25, %s1458_s25   ;;  %s1199_s24 = sphi %s1259_s24, %s1457_s24   ;;  %s1195_s23 = sphi %s1257_s23, %s1456_s23   ;;  %s1191_s22 = sphi %s1255_s22, %s1455_s22   ;;  %s1187_s21 = sphi %s1253_s21, %s1454_s21  }
   0x7   : > { %p30_p0 = scmp.ge.s32.totalorder %s29_s29, 3  ;;  %s32_s30 = sadd.s32 1, %s1203_s25 }
   0x8   : > { %s36_s7 = sadd.s32 1, %s1207_s26  ;;  %p940_p1 = scmp.ge.s32.totalorder %s1211_s27, 1 }
   0x9   : > { %s1461_s29 = smov (%p30_p0, %s29_s29), 0  ;;  %s1463_s30 = smov (!%p30_p0, %s32_s30), %s1203_s25 }
   0xa   : > { %p216_p2 = scmp.lt.s32.totalorder %s1211_s27, 13  ;;  %p34_p3 = scmp.ge.s32.totalorder %s1463_s30, 2 }
   0xb   : > { %p1297_p4 = scmp.eq.s32.totalorder %s938_s28, 0  ;;  %s1451_s0 = sld [smem:[#allocation9_spill]] }
   0xc   : > { %p217_p5 = pnand %p940_p1, %p216_p2  ;;  %s1465_s30 = smov (%p34_p3, %s1463_s30), 0 }
   0xd   : > { %s1467_s7 = smov (!%p34_p3, %s36_s7), %s1207_s26  ;;  %s1213_s12 = smov [#allocation5]  }
   0xe   : > { %p1041_p6 = pneg %p217_p5  ;;  %p38_p7 = scmp.ge.s32.totalorder %s1467_s7, 2 }
   0xf   : > { %287 = sbr.rel (%p217_p5) target bundleno = 865 (0x361), region = 44 }
  0x10   : > { %p1042_p8 = pnand %p1297_p4, %p1041_p6  ;;  %s1469_s7 = smov (%p38_p7, %s1467_s7), 0 }
  0x11   : > { %s228_s11 = sshll.u32 %s1451_s0, 4  ;;  %1452 = sst [smem:[#allocation8_spill]] %s1469_s7  ;;  %s229_s11 = int_to_ptr.vmem [resolvable:$true] %s228_s11 }
  0x12   : > { %1044 = dma.vmem_to_smem (!%p1042_p8), %s229_s11, 16, %s1213_s12, [#allocation6]  }
  0x14   : > { %1182 = dma.done.wait (%p1297_p4), [#allocation6], 16  }
  0x15   : > { %1184 = vsyncadd (%p1297_p4), [#allocation6], 4294967280 }
  0x16   : > { %294 = sfence }
  0x17   : > { %s945_s13 = sshll.u32 %s1191_s22, 2  ;;  %p347_p9 = scmp.lt.s32.totalorder %s1195_s23, 1 }
  0x18   : > { %p349_p10 = scmp.lt.s32.totalorder %s945_s13, 7  ;;  %s948_s14 = sshll.u32 %s1187_s21, 1 }
  0x19   : > { %s1471_s23 = smov (!%p347_p9, %s1195_s23), 1  ;;  %p359_p11 = scmp.lt.s32.totalorder %s948_s14, 5 }
  0x1a   : > { %s1473_s13 = smov (!%p349_p10, %s945_s13), 7  ;;  %s946_s15 = sshll.u32 %s1471_s23, 3 }
  0x1b   : > { %s352_s16 = sadd.s32 %s946_s15, %s1473_s13  ;;  %s1036_s17 = smul.u32 12, %s1471_s23 }
  0x1c   : > { %s947_s18 = sshll.u32 %s352_s16, 2  ;;  %s953_s19 = sshll.u32 %s352_s16, 3 }
  0x1d   : > { %s1322_s8 = scalar_lea.vmem %s1443_s1, %s947_s18  ;;  %s1327_s22 = scalar_lea.vmem %s1445_s3, %s953_s19 }
  0x1e   : > { %s1475_s14 = smov (!%p359_p11, %s948_s14), 5  ;;  %s1332_s0 = scalar_lea.vmem %s1448_s6, %s953_s19 }
  0x1f   : > { %s949_s13 = sshll.u32 %s1475_s14, 1  ;;  %p957_p12 = scmp.ne.s32.totalorder %s1187_s21, 0 }
  0x20   : > { %s363_s23 = sadd.s32 %s1036_s17, %s949_s13 }
  0x21   : > { %s950_s15 = sshll.u32 %s363_s23, 2  ;;  %391 = sbr.rel (%p957_p12) target bundleno = 51 (0x33), region = 52 }
  0x22   : > { %s1337_s20 = scalar_lea.vmem %s1444_s2, %s950_s15 }
  0x26   : > { %vm392_vm0 = vcmask 7168   ;;  %v1214_v0 = vmov -inf   ;;  %v1215_v1 = vmov 0.0  }
  0x27   : > { %393 = vst.msk [vmem:[#allocation2] sm:$0xff] %vm392_vm0, %v1214_v0 }
  0x28   : > { %394 = vst.msk [vmem:[#allocation2 + $0x8] sm:$0xff] %vm392_vm0, %v1214_v0 }
  0x29   : > { %395 = vst.msk [vmem:[#allocation2 + $0x10] sm:$0xff] %vm392_vm0, %v1214_v0 }
  0x2a   : > { %396 = vst.msk [vmem:[#allocation2 + $0x18] sm:$0xff] %vm392_vm0, %v1214_v0 }
  0x2b   : > { %397 = vst.msk [vmem:[#allocation3] sm:$0xff] %vm392_vm0, %v1215_v1 }
  0x2c   : > { %398 = vst.msk [vmem:[#allocation3 + $0x8] sm:$0xff] %vm392_vm0, %v1215_v1 }
  0x2d   : > { %399 = vst.msk [vmem:[#allocation3 + $0x10] sm:$0xff] %vm392_vm0, %v1215_v1 }
  0x2e   : > { %400 = vst.msk [vmem:[#allocation3 + $0x18] sm:$0xff] %vm392_vm0, %v1215_v1 }
  0x2f   : > { %401 = vst [vmem:[#allocation4 + $0x10] sm:$0xff] %v1215_v1 }
  0x30   : > { %402 = vst [vmem:[#allocation4] sm:$0xff] %v1215_v1 }
  0x31   : > { %403 = vst [vmem:[#allocation4 + $0x18] sm:$0xff] %v1215_v1 }
  0x32   : > { %404 = vst [vmem:[#allocation4 + $0x8] sm:$0xff] %v1215_v1 }
  0x33 PF: > { %v968_v2 = vld [vmem:[%s1337_s20] sm:$0xf]  ;;  %v1017_v3 = vld [vmem:[%s1337_s20 + $0x4] sm:$0xf0]  ;;  %v449_v7 = vlaneseq  ;;  %s970_s7 = sshll.u32 %s1187_s21, 4  ;;  %vm462_vm2 = vcmask 130048  }
  0x34   : > { %v969_v4 = vor.u32 %v1017_v3, %v968_v2  ;;  %v1014_v5 = vld [vmem:[%s1322_s8] sm:$0xff]  ;;  %v1015_v6 = vld [vmem:[%s1322_s8 + $0x8] sm:$0xff]  ;;  %v451_v9 = vstv %s970_s7  ;;  %v1216_v23 = vmov 0   ;;  %vm547_vm3 = vcmask 7168   ;;  %v460_v28 = vld [vmem:[#allocation2 + $0x10] sm:$0xff]  ;;  %p977_p13 = scmp.ne.s32.totalorder %s1187_s21, 2 }
  0x35   : > { %v450_v8 = vand.u32 127, %v449_v7  ;;  %1109 = vset.pattern.permute.xlu0 %v1216_v23  ;;  %1108 = vset.pattern.permute.xlu2 %v1216_v23  ;;  %v458_v24 = vld [vmem:[#allocation2] sm:$0xff]  ;;  %v459_v30 = vld [vmem:[#allocation2 + $0x8] sm:$0xff]  ;;  %v461_v38 = vld [vmem:[#allocation2 + $0x18] sm:$0xff]  ;;  %s627_s7 = sld [smem:[#allocation5]] (!%p977_p13) }
  0x36   : > { %436 = vmatpush.bf16.xpose.msra.mxu0 %v969_v4  ;;  %1026 = vmatpush.bf16.xpose.msra.mxu2 %v969_v4  ;;  %v1016_v48 = vld [vmem:[%s1337_s20 + $0x4] sm:$0xf]  ;;  %v971_v49 = vld [vmem:[%s1337_s20 + $0x8] sm:$0xf0]  ;;  %s978_s14 = sld [smem:[#allocation5 + $0x1]] (!%p977_p13) }
  0x37   : > { %v452_v10 = vadd.s32 %v451_v9, %v450_v8  ;;  %1110 = vset.pattern.permute.xlu1 %v1216_v23  ;;  %v974_v50 = vor.u32 %v1016_v48, %v971_v49  ;;  %s979_s18 = sld [smem:[#allocation5 + $0x2]] (!%p977_p13) }
  0x39   : > { %vm453_vm1 = vcmp.lt.s32.totalorder %v452_v10, 36  ;;  %1027 = vmatpush.bf16.msra.mxu3 %v974_v50  ;;  %599 = vmatpush.bf16.msra.mxu1 %v974_v50 }
  0x3c   : > { %s670_s17 = ssub.f32 (!%p977_p13), %s978_s14, %s627_s7 }
  0x3d   : > { %437 = vmatmul.bf16.vlgmr.msra.gmra.mxu0 %v1014_v5  ;;  %442 = vmatmul.bf16.vlgmr.msra.gmra.mxu2 %v1015_v6 }
  0xba   : > { %v438_v11 = vpop.f32.mrf.mxu0 }
  0xbb   : > { %v1345_v12 = vsel %vm453_vm1, %v438_v11, -1e+30 }
  0xbc   : > { %v463_v13 = vsel %vm462_vm2, %v1345_v12, -inf }
  0xbd   : > { %464 = vmax.xlane.f32.xlu1 %v463_v13 }
  0xc0   : > { %v443_v14 = vpop.f32.mrf.mxu2 }
  0xc1   : > { %v1349_v15 = vsel %vm453_vm1, %v443_v14, -1e+30 }
  0xc2   : > { %v440_v16 = vpop.f32.mrf.mxu0  ;;  %v469_v17 = vsel %vm462_vm2, %v1349_v15, -inf }
  0xc3   : > { %v1353_v18 = vsel %vm453_vm1, %v440_v16, -1e+30  ;;  %470 = vmax.xlane.f32.xlu0 %v469_v17  ;;  %v526_v17 = vld [vmem:[#allocation3 + $0x18] sm:$0xff] }
  0xc4   : > { %v466_v19 = vsel %vm462_vm2, %v1353_v18, -inf }
  0xc5   : > { %467 = vmax.xlane.f32.xlu1 %v466_v19 }
  0xc8   : > { %v445_v20 = vpop.f32.mrf.mxu2 }
  0xc9   : > { %v457_v21 = vsel %vm453_vm1, %v445_v20, -1e+30 }
  0xca   : > { %v472_v22 = vsel %vm462_vm2, %v457_v21, -inf }
  0xcb   : > { %473 = vmax.xlane.f32.xlu0 %v472_v22 }
 0x130   : > { %v465_v25 = vpop.xlane.xlu1 %464 }
 0x131   : > { %v475_v26 = vmax.f32 %v458_v24, %v465_v25  ;;  %v554_v25 = vld [vmem:[#allocation4 + $0x18] sm:$0xff] }
 0x133   : > { %619 = vst.msk [vmem:[#allocation2] sm:$0xff] %vm547_vm3, %v475_v26  ;;  %493 = vperm.xlu0 %1109, %v475_v26   ;;  %v479_v27 = vsub.f32 %v458_v24, %v475_v26  ;;  %v524_v26 = vld [vmem:[#allocation3 + $0x8] sm:$0xff] }
 0x135   : > { %v483_v32 = vmul.f32 1.442695, %v479_v27 }
 0x136   : > { %v471_v29 = vpop.xlane.xlu0 %470 }
 0x137   : > { %v477_v31 = vmax.f32 %v460_v28, %v471_v29  ;;  %1111 = vpow2.f32 %v483_v32 }
 0x138   : > { %v468_v33 = vpop.xlane.xlu1 %467 }
 0x139   : > { %v481_v34 = vsub.f32 %v460_v28, %v477_v31  ;;  %621 = vst.msk [vmem:[#allocation2 + $0x10] sm:$0xff] %vm547_vm3, %v477_v31  ;;  %v476_v35 = vmax.f32 %v459_v30, %v468_v33  ;;  %503 = vperm.xlu2 %1108, %v477_v31   ;;  %v555_v33 = vld [vmem:[#allocation4 + $0x8] sm:$0xff] }
 0x13b   : > { %v487_v36 = vmul.f32 1.442695, %v481_v34  ;;  %620 = vst.msk [vmem:[#allocation2 + $0x8] sm:$0xff] %vm547_vm3, %v476_v35  ;;  %498 = vperm.xlu1 %1110, %v476_v35   ;;  %v480_v37 = vsub.f32 %v459_v30, %v476_v35  ;;  %v552_v35 = vld [vmem:[#allocation4 + $0x10] sm:$0xff] }
 0x13d   : > { %1113 = vpow2.f32 %v487_v36  ;;  %v485_v41 = vmul.f32 1.442695, %v480_v37  ;;  %v1362_v42 = vpop.eup %1111 }
 0x13e   : > { %v474_v39 = vpop.xlane.xlu0 %473 }
 0x13f   : > { %v478_v40 = vmax.f32 %v461_v38, %v474_v39  ;;  %1115 = vpow2.f32 %v485_v41  ;;  %v553_v41 = vld [vmem:[#allocation4] sm:$0xff] }
 0x141   : > { %622 = vst.msk [vmem:[#allocation2 + $0x18] sm:$0xff] %vm547_vm3, %v478_v40  ;;  %508 = vperm.xlu2 %1108, %v478_v40   ;;  %v482_v44 = vsub.f32 %v461_v38, %v478_v40 }
 0x143   : > { %v1114_v43 = vpop.eup %1113  ;;  %558 = vperm.xlu1 %1110, %v1362_v42   ;;  %v489_v45 = vmul.f32 1.442695, %v482_v44 }
 0x144   : > { %568 = vperm.xlu0 %1109, %v1114_v43  }
 0x145   : > { %v1365_v46 = vpop.eup %1115  ;;  %1117 = vpow2.f32 %v489_v45 }
 0x146   : > { %v528_v29 = vmul.f32 %v1365_v46, %v524_v26 }
 0x14b   : > { %563 = vperm.xlu1 %1110, %v1365_v46   ;;  %v1118_v47 = vpop.eup %1117 }
 0x153   : > { %573 = vperm.xlu1 %1110, %v1118_v47  }
 0x193   : > { %v504_v51 = vpop.permute.xlu2 %503 }
 0x194   : > { %v513_v52 = vsub.f32 %v1349_v15, %v504_v51 }
 0x196   : > { %v519_v53 = vmul.f32 1.442695, %v513_v52 }
 0x198   : > { %1119 = vpow2.f32 %v519_v53 }
 0x19b   : > { %v509_v54 = vpop.permute.xlu2 %508 }
 0x19c   : > { %v514_v55 = vsub.f32 %v457_v21, %v509_v54  ;;  %v523_v21 = vld [vmem:[#allocation3] sm:$0xff] }
 0x19d   : > { %v527_v22 = vmul.f32 %v1362_v42, %v523_v21 }
 0x19e   : > { %v1120_v56 = vpop.eup %1119  ;;  %v521_v57 = vmul.f32 1.442695, %v514_v55 }
 0x19f   : > { %v537_v58 = vsel %vm462_vm2, %v1120_v56, 0.0 }
 0x1a0   : > { %1121 = vpow2.f32 %v521_v57  ;;  %538 = vadd.xlane.f32.xlu0 %v537_v58 }
 0x1a5   : > { %v494_v59 = vpop.permute.xlu0 %493 }
 0x1a6   : > { %v1122_v60 = vpop.eup %1121  ;;  %v511_v61 = vsub.f32 %v1345_v12, %v494_v59  ;;  %v525_v12 = vld [vmem:[#allocation3 + $0x10] sm:$0xff] }
 0x1a7   : > { %v540_v62 = vsel %vm462_vm2, %v1122_v60, 0.0  ;;  %v581_v63 = vpack.c.bf16 %v1122_v60, %v1120_v56  ;;  %v529_v13 = vmul.f32 %v1114_v43, %v525_v12 }
 0x1a8   : > { %v515_v0 = vmul.f32 1.442695, %v511_v61  ;;  %541 = vadd.xlane.f32.xlu1 %v540_v62 }
 0x1a9   : > { %976 = vmatmul.msk.bf16.vlgmr.msra.gmra.mxu3 %vm462_vm2, %v581_v63 }
 0x1aa   : > { %1123 = vpow2.f32 %v515_v0 }
 0x1ad   : > { %v499_v1 = vpop.permute.xlu1 %498 }
 0x1ae   : > { %v512_v2 = vsub.f32 %v1353_v18, %v499_v1  ;;  %v530_v18 = vmul.f32 %v1118_v47, %v526_v17 }
 0x1b0   : > { %v1124_v3 = vpop.eup %1123  ;;  %v517_v4 = vmul.f32 1.442695, %v512_v2 }
 0x1b1   : > { %v531_v5 = vsel %vm462_vm2, %v1124_v3, 0.0 }
 0x1b2   : > { %1125 = vpow2.f32 %v517_v4  ;;  %532 = vadd.xlane.f32.xlu2 %v531_v5 }
 0x1b5   : > { %v559_v9 = vpop.permute.xlu1 %558 }
 0x1b6   : > { %v569_v11 = vpop.permute.xlu0 %568  ;;  %v576_v38 = vmul.f32 %v559_v9, %v552_v35 }
 0x1b7   : > { %v578_v27 = vmul.f32 %v569_v11, %v554_v25 }
 0x1b8   : > { %v1126_v6 = vpop.eup %1125 }
 0x1b9   : > { %v534_v7 = vsel %vm462_vm2, %v1126_v6, 0.0  ;;  %v580_v8 = vpack.c.bf16 %v1126_v6, %v1124_v3 }
 0x1ba   : > { %535 = vadd.xlane.f32.xlu2 %v534_v7 }
 0x1bb   : > { %975 = vmatmul.msk.bf16.vlgmr.msra.gmra.mxu1 %vm462_vm2, %v580_v8 }
 0x1bd   : > { %v564_v10 = vpop.permute.xlu1 %563 }
 0x1be   : > { %v577_v42 = vmul.f32 %v564_v10, %v553_v41 }
 0x1c5   : > { %v574_v14 = vpop.permute.xlu1 %573 }
 0x1c6   : > { %v579_v34 = vmul.f32 %v574_v14, %v555_v33 }
 0x213   : > { %v539_v15 = vpop.xlane.xlu0 %538 }
 0x214   : > { %v545_v16 = vadd.f32 %v539_v15, %v529_v13 }
 0x216   : > { %550 = vst.msk [vmem:[#allocation3 + $0x10] sm:$0xff] %vm547_vm3, %v545_v16 }
 0x21b   : > { %v542_v19 = vpop.xlane.xlu1 %541 }
 0x21c   : > { %v546_v20 = vadd.f32 %v542_v19, %v530_v18 }
 0x21e   : > { %551 = vst.msk [vmem:[#allocation3 + $0x18] sm:$0xff] %vm547_vm3, %v546_v20 }
 0x225   : > { %v533_v23 = vpop.xlane.xlu2 %532 }
 0x226   : > { %v543_v24 = vadd.f32 %v533_v23, %v527_v22 }
 0x228   : > { %548 = vst.msk [vmem:[#allocation3] sm:$0xff] %vm547_vm3, %v543_v24 }
 0x22c   : > { %v606_v28 = vpop.f32.mrf.mxu3 }
 0x22d   : > { %v613_v30 = vadd.f32 %v606_v28, %v578_v27  ;;  %v536_v31 = vpop.xlane.xlu2 %535 }
 0x22e   : > { %v544_v32 = vadd.f32 %v536_v31, %v528_v29 }
 0x22f   : > { %617 = vst [vmem:[#allocation4 + $0x18] sm:$0xff] %v613_v30 }
 0x230   : > { %549 = vst.msk [vmem:[#allocation3 + $0x8] sm:$0xff] %vm547_vm3, %v544_v32 }
 0x234   : > { %v608_v36 = vpop.f32.mrf.mxu3 }
 0x235   : > { %v614_v37 = vadd.f32 %v608_v36, %v579_v34 }
 0x237   : > { %618 = vst [vmem:[#allocation4 + $0x8] sm:$0xff] %v614_v37 }
 0x238   : > { %v601_v39 = vpop.f32.mrf.mxu1 }
 0x239   : > { %v611_v40 = vadd.f32 %v601_v39, %v576_v38 }
 0x23b   : > { %615 = vst [vmem:[#allocation4 + $0x10] sm:$0xff] %v611_v40 }
 0x23f   : > { %626 = sbr.rel (%p977_p13) target bundleno = 865 (0x361), region = 56 }
 0x240   : > { %v603_v43 = vpop.f32.mrf.mxu1 }
 0x241   : > { %v612_v44 = vadd.f32 %v603_v43, %v577_v42 }
 0x243   : > { %616 = vst [vmem:[#allocation4] sm:$0xff] %v612_v44 }
 0x244   : > { %v636_v45 = vld [vmem:[#allocation3 + $0x10] sm:$0xff]  ;;  %v634_v46 = vld [vmem:[#allocation3] sm:$0xff]  ;;  %v1217_v47 = vmov 0   ;;  %v1025_v48 = vld [vmem:[%s1446_s4 + $0x38] sm:$0xff]  ;;  %v671_v5 = vstv %s670_s17  ;;  %v680_v21 = vstv %s627_s7  ;;  %v774_v31 = vstv %s979_s18 }
 0x245   : > { %1128 = vset.pattern.permute.xlu1 %v1217_v47  ;;  %1127 = vset.pattern.permute.xlu0 %v1217_v47  ;;  %1130 = vrcp.f32 %v636_v45  ;;  %v1024_v49 = vld [vmem:[%s1446_s4 + $0x30] sm:$0xff]  ;;  %v637_v50 = vld [vmem:[#allocation3 + $0x18] sm:$0xff]  ;;  %v635_v51 = vld [vmem:[#allocation3 + $0x8] sm:$0xff] }
 0x246   : > { %1132 = vrcp.f32 %v634_v46  ;;  %755 = vmatpush.bf16.msra.mxu0 %v1025_v48  ;;  %1028 = vmatpush.bf16.msra.mxu1 %v1025_v48  ;;  %v1023_v53 = vld [vmem:[%s1446_s4 + $0x28] sm:$0xff]  ;;  %v1022_v57 = vld [vmem:[%s1446_s4 + $0x20] sm:$0xff]  ;;  %v1021_v58 = vld [vmem:[%s1446_s4 + $0x18] sm:$0xff] }
 0x247   : > { %1134 = vrcp.f32 %v637_v50  ;;  %v1020_v59 = vld [vmem:[%s1446_s4 + $0x10] sm:$0xff]  ;;  %v1019_v60 = vld [vmem:[%s1446_s4 + $0x8] sm:$0xff]  ;;  %v1018_v61 = vld [vmem:[%s1446_s4] sm:$0xff] }
 0x248   : > { %1136 = vrcp.f32 %v635_v51  ;;  %v632_v62 = vld [vmem:[#allocation4 + $0x18] sm:$0xff]  ;;  %v630_v63 = vld [vmem:[#allocation4 + $0x10] sm:$0xff]  ;;  %v633_v7 = vld [vmem:[#allocation4 + $0x8] sm:$0xff] }
 0x249   : > { %v1129_v30 = vld [vmem:[%s1447_s5] ss:$0 sm:$0xff]  ;;  %v781_v36 = vld [vmem:[%s1327_s22 + $0x10] sm:$0xff]  ;;  %v782_v46 = vld [vmem:[%s1327_s22 + $0x18] sm:$0xff] }
 0x24a   : > { %756 = vmatpush.bf16.msra.mxu0 %v1024_v49  ;;  %1029 = vmatpush.bf16.msra.mxu1 %v1024_v49  ;;  %v631_v8 = vld [vmem:[#allocation4] sm:$0xff]  ;;  %v780_v47 = vld [vmem:[%s1327_s22 + $0x8] sm:$0xff] }
 0x24b   : > { %v1131_v52 = vpop.eup %1130  ;;  %v779_v37 = vld [vmem:[%s1327_s22] sm:$0xff] }
 0x24c   : > { %v1133_v54 = vpop.eup %1132  ;;  %654 = vperm.xlu1 %1128, %v1131_v52  }
 0x24d   : > { %644 = vperm.xlu0 %1127, %v1133_v54   ;;  %v1135_v55 = vpop.eup %1134 }
 0x24e   : > { %757 = vmatpush.bf16.msra.mxu0 %v1023_v53  ;;  %1030 = vmatpush.bf16.msra.mxu1 %v1023_v53  ;;  %v1137_v56 = vpop.eup %1136 }
 0x252   : > { %758 = vmatpush.bf16.msra.mxu0 %v1022_v57  ;;  %1031 = vmatpush.bf16.msra.mxu1 %v1022_v57 }
 0x254   : > { %659 = vperm.xlu1 %1128, %v1135_v55  }
 0x255   : > { %649 = vperm.xlu0 %1127, %v1137_v56  }
 0x256   : > { %759 = vmatpush.bf16.msra.mxu0 %v1021_v58  ;;  %1032 = vmatpush.bf16.msra.mxu1 %v1021_v58 }
 0x25a   : > { %760 = vmatpush.bf16.msra.mxu0 %v1020_v59  ;;  %1033 = vmatpush.bf16.msra.mxu1 %v1020_v59 }
 0x25e   : > { %761 = vmatpush.bf16.msra.mxu0 %v1019_v60  ;;  %1034 = vmatpush.bf16.msra.mxu1 %v1019_v60 }
 0x262   : > { %762 = vmatpush.bf16.msra.mxu0 %v1018_v61  ;;  %1035 = vmatpush.bf16.msra.mxu1 %v1018_v61 }
 0x2be   : > { %v655_v0 = vpop.permute.xlu1 %654 }
 0x2bf   : > { %v664_v1 = vmul.f32 %v655_v0, %v632_v62  ;;  %v645_v2 = vpop.permute.xlu0 %644 }
 0x2c0   : > { %v662_v3 = vmul.f32 %v645_v2, %v630_v63 }
 0x2c1   : > { %v668_v4 = vadd.f32 1.0, %v664_v1 }
 0x2c2   : > { %v666_v6 = vadd.f32 1.0, %v662_v3 }
 0x2c3   : > { %v674_v10 = vmul.f32 %v671_v5, %v668_v4 }
 0x2c4   : > { %v672_v13 = vmul.f32 %v671_v5, %v666_v6 }
 0x2c5   : > { %v678_v17 = vmul.f32 0.5, %v674_v10 }
 0x2c6   : > { %v660_v9 = vpop.permute.xlu1 %659  ;;  %v676_v19 = vmul.f32 0.5, %v672_v13 }
 0x2c7   : > { %v665_v11 = vmul.f32 %v660_v9, %v633_v7  ;;  %v650_v12 = vpop.permute.xlu0 %649  ;;  %v683_v24 = vadd.f32 %v680_v21, %v678_v17 }
 0x2c8   : > { %v663_v14 = vmul.f32 %v650_v12, %v631_v8  ;;  %v681_v26 = vadd.f32 %v680_v21, %v676_v19 }
 0x2c9   : > { %v669_v15 = vadd.f32 1.0, %v665_v11 }
 0x2ca   : > { %v667_v16 = vadd.f32 1.0, %v663_v14 }
 0x2cb   : > { %v675_v18 = vmul.f32 %v671_v5, %v669_v15 }
 0x2cc   : > { %v673_v20 = vmul.f32 %v671_v5, %v667_v16 }
 0x2cd   : > { %v679_v22 = vmul.f32 0.5, %v675_v18 }
 0x2ce   : > { %v677_v23 = vmul.f32 0.5, %v673_v20 }
 0x2cf   : > { %v684_v25 = vadd.f32 %v680_v21, %v679_v22 }
 0x2d0   : > { %v682_v27 = vadd.f32 %v680_v21, %v677_v23 }
 0x2d1   : > { %v686_v28 = vpack.c.bf16 %v684_v25, %v683_v24 }
 0x2d2   : > { %v685_v29 = vpack.c.bf16 %v682_v27, %v681_v26 }
 0x2d3   : > { %768 = vmatmul.bf16.vlgmr.msra.gmra.mxu1 %v686_v28 }
 0x2d4   : > { %763 = vmatmul.bf16.vlgmr.msra.gmra.mxu0 %v685_v29 }
 0x350   : > { %v769_v32 = vpop.f32.mrf.mxu1 }
 0x351   : > { %v764_v33 = vpop.f32.mrf.mxu0  ;;  %v770_v34 = vadd.f32 %v1129_v30, %v769_v32 }
 0x352   : > { %v765_v35 = vadd.f32 %v1129_v30, %v764_v33 }
 0x353   : > { %v777_v38 = vmul.f32 %v774_v31, %v770_v34 }
 0x354   : > { %v775_v39 = vmul.f32 %v774_v31, %v765_v35 }
 0x355   : > { %v785_v40 = vadd.f32 %v781_v36, %v777_v38 }
 0x356   : > { %v783_v41 = vadd.f32 %v779_v37, %v775_v39 }
 0x357   : > { %789 = vst [vmem:[%s1332_s0 + $0x10] sm:$0xff] %v785_v40 }
 0x358   : > { %787 = vst [vmem:[%s1332_s0] sm:$0xff] %v783_v41  ;;  %v771_v42 = vpop.f32.mrf.mxu1 }
 0x359   : > { %v766_v43 = vpop.f32.mrf.mxu0  ;;  %v772_v44 = vadd.f32 %v1129_v30, %v771_v42 }
 0x35a   : > { %v767_v45 = vadd.f32 %v1129_v30, %v766_v43 }
 0x35b   : > { %v778_v48 = vmul.f32 %v774_v31, %v772_v44 }
 0x35c   : > { %v776_v49 = vmul.f32 %v774_v31, %v767_v45 }
 0x35d   : > { %v786_v50 = vadd.f32 %v782_v46, %v778_v48 }
 0x35e   : > { %v784_v51 = vadd.f32 %v780_v47, %v776_v49 }
 0x35f   : > { %790 = vst [vmem:[%s1332_s0 + $0x18] sm:$0xff] %v786_v50 }
 0x360   : > { %788 = vst [vmem:[%s1332_s0 + $0x8] sm:$0xff] %v784_v51 }
 0x361 PF: > { %s17_s27 = sadd.s32 1, %s1211_s27   ;;  %s1453_s28 = sld [smem:[#allocation8_spill]] }
 0x362   : > { %p14_p0 = scmp.ge.s32.totalorder %s17_s27, 14   ;;  %s1454_s21 = smov %s1199_s24 }
 0x363   : > { %s1455_s22 = smov %s1203_s25  ;;  %s1456_s23 = smov %s1207_s26 }
 0x364   : > { %s1457_s24 = smov %s1461_s29  ;;  %s1458_s25 = smov %s1465_s30 }
 0x365   :  { %16 = sbr.rel (!%p14_p0) target bundleno = 6 (0x6), region = 93 }
 0x367   : > { %s1459_s26 = smov %s1453_s28 }
 0x36a   :  { %821 = vsyncpa [#allocation6], 1 }
 0x36b   :  { %823 = vsyncpa [#allocation6 + $0x1], 1 }

</bundles_post_ra>
